<compile_context>
chip_gen: v7x
topology: tpu7x:2x2x1
jax: 0.10.0
libtpu: 0.0.40
codegen_flags: <defaults>
</compile_context>

<pallas_src>
import numpy as np

import jax
import jax.numpy as jnp
from jax.experimental import pallas as pl
from jax.experimental.pallas import tpu as pltpu

F32 = jnp.float32
BF16 = jnp.bfloat16

# dot_general dimension numbers for q @ k^T without materializing a transpose.
TRANS_B = (((1,), (1,)), ((), ()))

_COMPILER_PARAMS = pltpu.CompilerParams(
    dimension_semantics=("parallel",),
    vmem_limit_bytes=64 * 1024 * 1024,
)


# --------------------------------------------------------------------------
# In-kernel building blocks
# --------------------------------------------------------------------------
def _layernorm(x, gamma, beta, eps=1e-6):
    # x: (S, D) f32; gamma/beta: (1, D) f32. Biased variance (PyTorch LayerNorm).
    mean = jnp.mean(x, axis=-1, keepdims=True)
    var = jnp.mean((x - mean) ** 2, axis=-1, keepdims=True)
    return (x - mean) * jax.lax.rsqrt(var + eps) * gamma + beta


def _mha(q, k, v, mask_neg, wo3_ref, bo):
    """Multi-head attention core.

    q: (Sq, D) f32, k/v: (Sk, D) f32 (already projected, bias added).
    mask_neg: (1 or Sq, Sk) f32, already scaled by -1e9.
    wo3_ref: (H, depth, D) bf16 ref (output projection split per head).
    Returns (Sq, D) f32 == concat(heads) @ Wo + bo, computed by accumulating
    the output projection per head (no concatenate, one head live at a time).
    """
    num_heads, depth, _ = wo3_ref.shape
    scale = 1.0 / float(depth) ** 0.5

    # Fold 1/sqrt(depth) into q once; cast operands to bf16 once (per-head
    # slices below are then plain lane-range views, no per-head casts).
    q_b = (q * scale).astype(BF16)
    k_b = k.astype(BF16)
    v_b = v.astype(BF16)

    acc = None
    for h in range(num_heads):
        sl = slice(h * depth, (h + 1) * depth)

        # (Sq, Sk) logits on the MXU, no explicit transpose of k.
        logits = jax.lax.dot_general(q_b[:, sl], k_b[:, sl], TRANS_B,
                                     preferred_element_type=F32)
        logits = logits + mask_neg
        logits = logits - jnp.max(logits, axis=-1, keepdims=True)
        p = jnp.exp(logits)
        attn = p * pl.reciprocal(jnp.sum(p, axis=-1, keepdims=True), approx=True)

        head_out = jnp.dot(attn.astype(BF16), v_b[:, sl],
                           preferred_element_type=F32)
        proj = jnp.dot(head_out.astype(BF16), wo3_ref[h],
                       preferred_element_type=F32)
        acc = proj if acc is None else acc + proj
    return acc + bo


# --------------------------------------------------------------------------
# Kernels
# --------------------------------------------------------------------------
def encoder_layer_kernel(
    x_ref, mask_ref,
    wqkv_ref, bqkv_ref, wo_ref, bo_ref,
    w1_ref, b1_ref, w2_ref, b2_ref,
    g1_ref, be1_ref, g2_ref, be2_ref,
    out_ref,
):
    x = x_ref[0]                              # (S, D) f32
    mask_neg = mask_ref[0] * (-1e9)           # (1 or S, S) -- hoisted once
    d = x.shape[-1]

    # Fused QKV projection (bf16 operands, f32 accumulation).
    qkv = jnp.dot(x.astype(BF16), wqkv_ref[...],
                  preferred_element_type=F32) + bqkv_ref[...]
    attn_out = _mha(qkv[:, 0:d], qkv[:, d:2 * d], qkv[:, 2 * d:3 * d],
                    mask_neg, wo_ref, bo_ref[...])

    # TODO(synk): dropout1/dropout2 are identity (eval-mode semantics).
    out1 = _layernorm(x + attn_out, g1_ref[...], be1_ref[...])

    h1 = jnp.dot(out1.astype(BF16), w1_ref[...],
                 preferred_element_type=F32) + b1_ref[...]
    h1 = jnp.maximum(h1, 0.0)
    ffn = jnp.dot(h1.astype(BF16), w2_ref[...],
                  preferred_element_type=F32) + b2_ref[...]

    out_ref[0] = _layernorm(out1 + ffn, g2_ref[...], be2_ref[...]).astype(out_ref.dtype)


def decoder_layer_kernel(
    x_ref, enc_ref, la_mask_ref, pad_mask_ref,
    wqkv1_ref, bqkv1_ref, wo1_ref, bo1_ref,
    wq2_ref, bq2_ref, wkv2_ref, bkv2_ref, wo2_ref, bo2_ref,
    w1_ref, b1_ref, w2_ref, b2_ref,
    g1_ref, be1_ref, g2_ref, be2_ref, g3_ref, be3_ref,
    out_ref,
):
    x = x_ref[0]                              # (St, D) f32
    enc = enc_ref[0]                          # (Si, D) f32
    la_neg = la_mask_ref[0] * (-1e9)          # (St or 1, St)
    pad_neg = pad_mask_ref[0] * (-1e9)        # (1, Si)
    d = x.shape[-1]

    # ---- masked self-attention (fused QKV) ----
    qkv = jnp.dot(x.astype(BF16), wqkv1_ref[...],
                  preferred_element_type=F32) + bqkv1_ref[...]
    attn1 = _mha(qkv[:, 0:d], qkv[:, d:2 * d], qkv[:, 2 * d:3 * d],
                 la_neg, wo1_ref, bo1_ref[...])
    out1 = _layernorm(x + attn1, g1_ref[...], be1_ref[...])

    # ---- cross-attention over encoder output (fused K/V) ----
    q2 = jnp.dot(out1.astype(BF16), wq2_ref[...],
                 preferred_element_type=F32) + bq2_ref[...]
    kv2 = jnp.dot(enc.astype(BF16), wkv2_ref[...],
                  preferred_element_type=F32) + bkv2_ref[...]
    attn2 = _mha(q2, kv2[:, 0:d], kv2[:, d:2 * d],
                 pad_neg, wo2_ref, bo2_ref[...])
    out2 = _layernorm(out1 + attn2, g2_ref[...], be2_ref[...])

    # ---- feed-forward ----
    h1 = jnp.dot(out2.astype(BF16), w1_ref[...],
                 preferred_element_type=F32) + b1_ref[...]
    h1 = jnp.maximum(h1, 0.0)
    ffn = jnp.dot(h1.astype(BF16), w2_ref[...],
                  preferred_element_type=F32) + b2_ref[...]

    # dropout3 is identity (eval mode).
    out_ref[0] = _layernorm(out2 + ffn, g3_ref[...], be3_ref[...]).astype(out_ref.dtype)


def final_linear_kernel(x_ref, w_ref, b_ref, out_ref):
    out_ref[0] = (jnp.dot(x_ref[0].astype(BF16), w_ref[...],
                          preferred_element_type=F32) + b_ref[...]).astype(out_ref.dtype)


# --------------------------------------------------------------------------
# Wrappers (BlockSpecs / pallas_call)
# --------------------------------------------------------------------------
def _const_spec(arr):
    """Full-array block whose index never changes (no re-DMA across grid)."""
    ndim = arr.ndim
    return pl.BlockSpec(arr.shape, lambda *_: (0,) * ndim)


def _mask_spec(mask):
    _, mq, sk = mask.shape
    if mask.shape[0] == 1:
        return pl.BlockSpec((1, mq, sk), lambda b: (0, 0, 0))
    return pl.BlockSpec((1, mq, sk), lambda b: (b, 0, 0))


def encoder_layer(x, mask, p):
    B, S, D = x.shape
    in_specs = [
        pl.BlockSpec((1, S, D), lambda b: (b, 0, 0)),
        _mask_spec(mask),
        _const_spec(p["wqkv"]), _const_spec(p["bqkv"]),
        _const_spec(p["wo"]), _const_spec(p["bo"]),
        _const_spec(p["w1"]), _const_spec(p["b1"]),
        _const_spec(p["w2"]), _const_spec(p["b2"]),
        _const_spec(p["gamma1"]), _const_spec(p["beta1"]),
        _const_spec(p["gamma2"]), _const_spec(p["beta2"]),
    ]
    return pl.pallas_call(
        encoder_layer_kernel,
        out_shape=jax.ShapeDtypeStruct((B, S, D), x.dtype),
        grid_spec=pltpu.PrefetchScalarGridSpec(
            num_scalar_prefetch=0, grid=(B,),
            in_specs=in_specs,
            out_specs=pl.BlockSpec((1, S, D), lambda b: (b, 0, 0))),
        compiler_params=_COMPILER_PARAMS,
    )(x, mask,
      p["wqkv"], p["bqkv"], p["wo"], p["bo"],
      p["w1"], p["b1"], p["w2"], p["b2"],
      p["gamma1"], p["beta1"], p["gamma2"], p["beta2"])


def decoder_layer(x, enc_output, look_ahead_mask, padding_mask, p):
    B, St, D = x.shape
    Si = enc_output.shape[1]
    in_specs = [
        pl.BlockSpec((1, St, D), lambda b: (b, 0, 0)),
        pl.BlockSpec((1, Si, D), lambda b: (b, 0, 0)),
        _mask_spec(look_ahead_mask),
        _mask_spec(padding_mask),
        _const_spec(p["wqkv1"]), _const_spec(p["bqkv1"]),
        _const_spec(p["wo1"]), _const_spec(p["bo1"]),
        _const_spec(p["wq2"]), _const_spec(p["bq2"]),
        _const_spec(p["wkv2"]), _const_spec(p["bkv2"]),
        _const_spec(p["wo2"]), _const_spec(p["bo2"]),
        _const_spec(p["w1"]), _const_spec(p["b1"]),
        _const_spec(p["w2"]), _const_spec(p["b2"]),
        _const_spec(p["gamma1"]), _const_spec(p["beta1"]),
        _const_spec(p["gamma2"]), _const_spec(p["beta2"]),
        _const_spec(p["gamma3"]), _const_spec(p["beta3"]),
    ]
    return pl.pallas_call(
        decoder_layer_kernel,
        out_shape=jax.ShapeDtypeStruct((B, St, D), x.dtype),
        grid_spec=pltpu.PrefetchScalarGridSpec(
            num_scalar_prefetch=0, grid=(B,),
            in_specs=in_specs,
            out_specs=pl.BlockSpec((1, St, D), lambda b: (b, 0, 0))),
        compiler_params=_COMPILER_PARAMS,
    )(x, enc_output, look_ahead_mask, padding_mask,
      p["wqkv1"], p["bqkv1"], p["wo1"], p["bo1"],
      p["wq2"], p["bq2"], p["wkv2"], p["bkv2"], p["wo2"], p["bo2"],
      p["w1"], p["b1"], p["w2"], p["b2"],
      p["gamma1"], p["beta1"], p["gamma2"], p["beta2"], p["gamma3"], p["beta3"])


def final_linear(x, w, b):
    B, S, D = x.shape
    V = w.shape[1]
    return pl.pallas_call(
        final_linear_kernel,
        out_shape=jax.ShapeDtypeStruct((B, S, V), x.dtype),
        grid_spec=pltpu.PrefetchScalarGridSpec(
            num_scalar_prefetch=0, grid=(B,),
            in_specs=[pl.BlockSpec((1, S, D), lambda b: (b, 0, 0)),
                      _const_spec(w), _const_spec(b)],
            out_specs=pl.BlockSpec((1, S, V), lambda b: (b, 0, 0))),
        compiler_params=_COMPILER_PARAMS,
    )(x, w, b)


def transformer_forward(inp, targ, enc_padding_mask, look_ahead_mask,
                        dec_padding_mask, params):
    d_model = params["enc_embedding"].shape[1]
    scale = jnp.sqrt(jnp.float32(d_model))
    pe = params["pos_encoding"]

    # TODO(synk): embedding gather + positional-encoding add and the dropout
    # layers (identity in eval mode) are done in plain JAX, not Pallas.
    x = params["enc_embedding"][inp] * scale + pe[:, :inp.shape[1], :]
    for lp in params["enc_layers"]:
        x = encoder_layer(x, enc_padding_mask, lp)
    enc_output = x

    y = params["dec_embedding"][targ] * scale + pe[:, :targ.shape[1], :]
    for lp in params["dec_layers"]:
        y = decoder_layer(y, enc_output, look_ahead_mask, dec_padding_mask, lp)

    # TODO(synk): per-layer attention-weight maps are not returned.
    return final_linear(y, params["wf"], params["bf"])


# --------------------------------------------------------------------------
# Parameters / positional encoding
# --------------------------------------------------------------------------
def positional_encoding(position, d_model):
    pos = np.arange(position)[:, None]
    i = np.arange(d_model)[None, :]
    angle_rates = 1.0 / np.power(10000, (2 * (i // 2)) / np.float32(d_model))
    angle_rads = pos * angle_rates
    angle_rads[:, 0::2] = np.sin(angle_rads[:, 0::2])
    angle_rads[:, 1::2] = np.cos(angle_rads[:, 1::2])
    return jnp.asarray(angle_rads[None, ...], dtype=jnp.float32)


def make_params(key, *, num_layers, d_model, num_heads, dff,
                input_vocab_size, target_vocab_size, max_pe):
    depth = d_model // num_heads
    keys = iter(jax.random.split(key, 256))

    def lin(fan_in, fan_out):
        bound = 1.0 / float(fan_in) ** 0.5
        w = jax.random.uniform(next(keys), (fan_in, fan_out), F32, -bound, bound)
        b = jax.random.uniform(next(keys), (1, fan_out), F32, -bound, bound)
        return w.astype(BF16), b            # matmul weights stored in bf16

    def ln_pair():
        return jnp.ones((1, d_model), F32), jnp.zeros((1, d_model), F32)

    def enc_layer():
        wqkv, bqkv = lin(d_model, 3 * d_model)
        wo, bo = lin(d_model, d_model)
        wo = wo.reshape(num_heads, depth, d_model)   # per-head slabs for the kernel
        w1, b1 = lin(d_model, dff)
        w2, b2 = lin(dff, d_model)
        g1, be1 = ln_pair()
        g2, be2 = ln_pair()
        return dict(wqkv=wqkv, bqkv=bqkv, wo=wo, bo=bo,
                    w1=w1, b1=b1, w2=w2, b2=b2,
                    gamma1=g1, beta1=be1, gamma2=g2, beta2=be2)

    def dec_layer():
        wqkv1, bqkv1 = lin(d_model, 3 * d_model)
        wo1, bo1 = lin(d_model, d_model)
        wo1 = wo1.reshape(num_heads, depth, d_model)
        wq2, bq2 = lin(d_model, d_model)
        wkv2, bkv2 = lin(d_model, 2 * d_model)
        wo2, bo2 = lin(d_model, d_model)
        wo2 = wo2.reshape(num_heads, depth, d_model)
        w1, b1 = lin(d_model, dff)
        w2, b2 = lin(dff, d_model)
        g1, be1 = ln_pair()
        g2, be2 = ln_pair()
        g3, be3 = ln_pair()
        return dict(wqkv1=wqkv1, bqkv1=bqkv1, wo1=wo1, bo1=bo1,
                    wq2=wq2, bq2=bq2, wkv2=wkv2, bkv2=bkv2, wo2=wo2, bo2=bo2,
                    w1=w1, b1=b1, w2=w2, b2=b2,
                    gamma1=g1, beta1=be1, gamma2=g2, beta2=be2,
                    gamma3=g3, beta3=be3)

    enc_emb = 0.3 * jax.random.normal(next(keys), (input_vocab_size, d_model), F32)
    dec_emb = 0.3 * jax.random.normal(next(keys), (target_vocab_size, d_model), F32)
    wf, bf = lin(d_model, target_vocab_size)

    return dict(
        enc_embedding=enc_emb, dec_embedding=dec_emb,
        pos_encoding=positional_encoding(max_pe, d_model),
        enc_layers=[enc_layer() for _ in range(num_layers)],
        dec_layers=[dec_layer() for _ in range(num_layers)],
        wf=wf, bf=bf)


# --------------------------------------------------------------------------
# Pure-JAX reference (same bf16-operand / f32-accumulate matmul policy)
# --------------------------------------------------------------------------
def _mm_ref(a, w):
    return jnp.dot(a.astype(BF16), w.astype(BF16), preferred_element_type=F32)


def _ln_ref(z, g, b, eps=1e-6):
    m = jnp.mean(z, -1, keepdims=True)
    v = jnp.mean((z - m) ** 2, -1, keepdims=True)
    return (z - m) / jnp.sqrt(v + eps) * g + b


def _mha_ref(q2d, k2d, v2d, wo2d, bo, mask, num_heads):
    B, Sq, D = q2d.shape
    depth = D // num_heads
    sh = lambda t: t.reshape(t.shape[0], t.shape[1], num_heads, depth).transpose(0, 2, 1, 3)
    q, k, v = sh(q2d), sh(k2d), sh(v2d)
    logits = jnp.einsum("bhqd,bhkd->bhqk", q.astype(BF16), k.astype(BF16),
                        preferred_element_type=F32) / jnp.sqrt(jnp.float32(depth))
    logits = logits + mask[:, None, :, :] * (-1e9)
    attn = jax.nn.softmax(logits, axis=-1)
    o = jnp.einsum("bhqk,bhkd->bhqd", attn.astype(BF16), v.astype(BF16),
                   preferred_element_type=F32)
    o = o.transpose(0, 2, 1, 3).reshape(B, Sq, D)
    return _mm_ref(o, wo2d) + bo


def _encoder_layer_ref(x, mask, p, num_heads):
    D = x.shape[-1]
    qkv = _mm_ref(x, p["wqkv"]) + p["bqkv"]
    attn = _mha_ref(qkv[..., :D], qkv[..., D:2 * D], qkv[..., 2 * D:],
                    p["wo"].reshape(D, D), p["bo"], mask, num_heads)
    out1 = _ln_ref(x + attn, p["gamma1"], p["beta1"])
    ffn = _mm_ref(jnp.maximum(_mm_ref(out1, p["w1"]) + p["b1"], 0.0), p["w2"]) + p["b2"]
    return _ln_ref(out1 + ffn, p["gamma2"], p["beta2"])


def _decoder_layer_ref(x, enc, la_mask, pad_mask, p, num_heads):
    D = x.shape[-1]
    qkv = _mm_ref(x, p["wqkv1"]) + p["bqkv1"]
    attn1 = _mha_ref(qkv[..., :D], qkv[..., D:2 * D], qkv[..., 2 * D:],
                     p["wo1"].reshape(D, D), p["bo1"], la_mask, num_heads)
    out1 = _ln_ref(x + attn1, p["gamma1"], p["beta1"])
    q2 = _mm_ref(out1, p["wq2"]) + p["bq2"]
    kv2 = _mm_ref(enc, p["wkv2"]) + p["bkv2"]
    attn2 = _mha_ref(q2, kv2[..., :D], kv2[..., D:],
                     p["wo2"].reshape(D, D), p["bo2"], pad_mask, num_heads)
    out2 = _ln_ref(out1 + attn2, p["gamma2"], p["beta2"])
    ffn = _mm_ref(jnp.maximum(_mm_ref(out2, p["w1"]) + p["b1"], 0.0), p["w2"]) + p["b2"]
    return _ln_ref(out2 + ffn, p["gamma3"], p["beta3"])


def transformer_ref(inp, targ, enc_mask, la_mask, dec_mask, params, *, num_heads):
    D = params["enc_embedding"].shape[1]
    scale = jnp.sqrt(jnp.float32(D))
    pe = params["pos_encoding"]
    x = params["enc_embedding"][inp] * scale + pe[:, :inp.shape[1], :]
    for p in params["enc_layers"]:
        x = _encoder_layer_ref(x, enc_mask, p, num_heads)
    y = params["dec_embedding"][targ] * scale + pe[:, :targ.shape[1], :]
    for p in params["dec_layers"]:
        y = _decoder_layer_ref(y, x, la_mask, dec_mask, p, num_heads)
    return _mm_ref(y, params["wf"]) + params["bf"]


# --------------------------------------------------------------------------
# Demo / self-check
# --------------------------------------------------------------------------
if __name__ == "__main__":
    NUM_LAYERS, D_MODEL, NUM_HEADS, DFF = 2, 32, 4, 64
    INPUT_VOCAB, TARGET_VOCAB, MAX_PE = 50, 60, 16
    B, S_IN, S_T = 2, 8, 8

    key = jax.random.PRNGKey(0)
    k_inp, k_targ, k_p = jax.random.split(key, 3)

    inp = jax.random.randint(k_inp, (B, S_IN), 0, INPUT_VOCAB)
    targ = jax.random.randint(k_targ, (B, S_T), 0, TARGET_VOCAB)

    # Padding masks (1.0 = masked), streamed as (B, 1, S) and broadcast over
    # the query dimension inside the kernel.
    enc_padding_mask = jnp.zeros((B, 1, S_IN), F32).at[:, :, -2:].set(1.0)
    dec_padding_mask = enc_padding_mask
    # Causal (look-ahead) mask, broadcast over batch.
    look_ahead_mask = jnp.triu(jnp.ones((S_T, S_T), F32), k=1)[None]

    params = make_params(k_p, num_layers=NUM_LAYERS, d_model=D_MODEL,
                         num_heads=NUM_HEADS, dff=DFF,
                         input_vocab_size=INPUT_VOCAB,
                         target_vocab_size=TARGET_VOCAB, max_pe=MAX_PE)

    out = transformer_forward(inp, targ, enc_padding_mask, look_ahead_mask,
                              dec_padding_mask, params)
    out = jax.block_until_ready(out)

    ref = transformer_ref(inp, targ, enc_padding_mask, look_ahead_mask,
                          dec_padding_mask, params, num_heads=NUM_HEADS)

    assert out.shape == (B, S_T, TARGET_VOCAB)
    err = jnp.max(jnp.abs(out - ref))
    assert jnp.allclose(out, ref, atol=2e-2, rtol=2e-2), f"max abs err {err}"

    print("KERNEL_OK")
</pallas_src>

<mosaic_0001>
module attributes {stable_mosaic.version = 11 : i64} {
  func.func @encoder_layer_kernel(%arg0: i32, %arg1: memref<1x8x32xf32, #tpu.memory_space<vmem>>, %arg2: memref<1x1x8xf32, #tpu.memory_space<vmem>>, %arg3: memref<32x96xbf16, #tpu.memory_space<vmem>>, %arg4: memref<1x96xf32, #tpu.memory_space<vmem>>, %arg5: memref<4x8x32xbf16, #tpu.memory_space<vmem>>, %arg6: memref<1x32xf32, #tpu.memory_space<vmem>>, %arg7: memref<32x64xbf16, #tpu.memory_space<vmem>>, %arg8: memref<1x64xf32, #tpu.memory_space<vmem>>, %arg9: memref<64x32xbf16, #tpu.memory_space<vmem>>, %arg10: memref<1x32xf32, #tpu.memory_space<vmem>>, %arg11: memref<1x32xf32, #tpu.memory_space<vmem>>, %arg12: memref<1x32xf32, #tpu.memory_space<vmem>>, %arg13: memref<1x32xf32, #tpu.memory_space<vmem>>, %arg14: memref<1x32xf32, #tpu.memory_space<vmem>>, %arg15: memref<1x8x32xf32, #tpu.memory_space<vmem>>) attributes {dimension_semantics = [#tpu.dimension_semantics<parallel>], iteration_bounds = array<i64: 2>, scalar_prefetch = 0 : i64, scratch_operands = 0 : i64, tpu.core_type = #tpu.core_type<tc>, window_params = [{transform_indices = @transform_0, window_bounds = array<i64: 1, 8, 32>}, {transform_indices = @transform_1, window_bounds = array<i64: 1, 1, 8>}, {pipeline_mode = #tpu.pipeline_mode<synchronous>, transform_indices = @transform_2, window_bounds = array<i64: 32, 96>}, {pipeline_mode = #tpu.pipeline_mode<synchronous>, transform_indices = @transform_3, window_bounds = array<i64: 1, 96>}, {pipeline_mode = #tpu.pipeline_mode<synchronous>, transform_indices = @transform_4, window_bounds = array<i64: 4, 8, 32>}, {pipeline_mode = #tpu.pipeline_mode<synchronous>, transform_indices = @transform_5, window_bounds = array<i64: 1, 32>}, {pipeline_mode = #tpu.pipeline_mode<synchronous>, transform_indices = @transform_6, window_bounds = array<i64: 32, 64>}, {pipeline_mode = #tpu.pipeline_mode<synchronous>, transform_indices = @transform_7, window_bounds = array<i64: 1, 64>}, {pipeline_mode = #tpu.pipeline_mode<synchronous>, transform_indices = @transform_8, window_bounds = array<i64: 64, 32>}, {pipeline_mode = #tpu.pipeline_mode<synchronous>, transform_indices = @transform_9, window_bounds = array<i64: 1, 32>}, {pipeline_mode = #tpu.pipeline_mode<synchronous>, transform_indices = @transform_10, window_bounds = array<i64: 1, 32>}, {pipeline_mode = #tpu.pipeline_mode<synchronous>, transform_indices = @transform_11, window_bounds = array<i64: 1, 32>}, {pipeline_mode = #tpu.pipeline_mode<synchronous>, transform_indices = @transform_12, window_bounds = array<i64: 1, 32>}, {pipeline_mode = #tpu.pipeline_mode<synchronous>, transform_indices = @transform_13, window_bounds = array<i64: 1, 32>}, {transform_indices = @transform_14, window_bounds = array<i64: 1, 8, 32>}]} {
    %c0 = arith.constant 0 : index
    %c0_0 = arith.constant 0 : index
    %c0_1 = arith.constant 0 : index
    %0 = vector.load %arg1[%c0, %c0_0, %c0_1] : memref<1x8x32xf32, #tpu.memory_space<vmem>>, vector<1x8x32xf32>
    %1 = vector.shape_cast %0 : vector<1x8x32xf32> to vector<8x32xf32>
    %c0_2 = arith.constant 0 : index
    %c0_3 = arith.constant 0 : index
    %c0_4 = arith.constant 0 : index
    %2 = vector.load %arg2[%c0_2, %c0_3, %c0_4] : memref<1x1x8xf32, #tpu.memory_space<vmem>>, vector<1x1x8xf32>
    %3 = vector.shape_cast %2 : vector<1x1x8xf32> to vector<1x8xf32>
    %cst = arith.constant -1.000000e+09 : f32
    %4 = vector.broadcast %cst : f32 to vector<1x8xf32>
    %5 = arith.mulf %3, %4 : vector<1x8xf32>
    %6 = arith.truncf %1 : vector<8x32xf32> to vector<8x32xbf16>
    %c0_5 = arith.constant 0 : index
    %c0_6 = arith.constant 0 : index
    %7 = vector.load %arg3[%c0_5, %c0_6] : memref<32x96xbf16, #tpu.memory_space<vmem>>, vector<32x96xbf16>
    %cst_7 = arith.constant dense<0.000000e+00> : vector<8x96xf32>
    %8 = tpu.matmul %6, %7, %cst_7 {dimension_numbers = #tpu.dot_dimension_numbers<[1], [0], [0], [1], [0, 0, 1, 1], [], []>} : vector<8x32xbf16>, vector<32x96xbf16>, vector<8x96xf32> -> vector<8x96xf32>
    %c0_8 = arith.constant 0 : index
    %c0_9 = arith.constant 0 : index
    %9 = vector.load %arg4[%c0_8, %c0_9] : memref<1x96xf32, #tpu.memory_space<vmem>>, vector<1x96xf32>
    %10 = vector.broadcast %9 : vector<1x96xf32> to vector<8x96xf32>
    %11 = arith.addf %8, %10 : vector<8x96xf32>
    %12 = vector.extract_strided_slice %11 {offsets = [0, 0], sizes = [8, 32], strides = [1, 1]} : vector<8x96xf32> to vector<8x32xf32>
    %13 = vector.extract_strided_slice %11 {offsets = [0, 32], sizes = [8, 32], strides = [1, 1]} : vector<8x96xf32> to vector<8x32xf32>
    %14 = vector.extract_strided_slice %11 {offsets = [0, 64], sizes = [8, 32], strides = [1, 1]} : vector<8x96xf32> to vector<8x32xf32>
    %c0_10 = arith.constant 0 : index
    %c0_11 = arith.constant 0 : index
    %15 = vector.load %arg6[%c0_10, %c0_11] : memref<1x32xf32, #tpu.memory_space<vmem>>, vector<1x32xf32>
    %cst_12 = arith.constant 0.353553385 : f32
    %16 = vector.broadcast %cst_12 : f32 to vector<8x32xf32>
    %17 = arith.mulf %12, %16 : vector<8x32xf32>
    %18 = arith.truncf %17 : vector<8x32xf32> to vector<8x32xbf16>
    %19 = arith.truncf %13 : vector<8x32xf32> to vector<8x32xbf16>
    %20 = arith.truncf %14 : vector<8x32xf32> to vector<8x32xbf16>
    %21 = vector.extract_strided_slice %18 {offsets = [0, 0], sizes = [8, 8], strides = [1, 1]} : vector<8x32xbf16> to vector<8x8xbf16>
    %22 = vector.extract_strided_slice %19 {offsets = [0, 0], sizes = [8, 8], strides = [1, 1]} : vector<8x32xbf16> to vector<8x8xbf16>
    %cst_13 = arith.constant dense<0.000000e+00> : vector<8x8xf32>
    %23 = tpu.matmul %21, %22, %cst_13 {dimension_numbers = #tpu.dot_dimension_numbers<[1], [1], [0], [0], [0, 0, 1, 0], [], []>} : vector<8x8xbf16>, vector<8x8xbf16>, vector<8x8xf32> -> vector<8x8xf32>
    %24 = vector.broadcast %5 : vector<1x8xf32> to vector<8x8xf32>
    %25 = arith.addf %23, %24 : vector<8x8xf32>
    %cst_14 = arith.constant dense<0xFF800000> : vector<8xf32>
    %26 = vector.multi_reduction <maximumf>, %25, %cst_14 [1] : vector<8x8xf32> to vector<8xf32>
    %27 = vector.shape_cast %26 : vector<8xf32> to vector<8x1xf32>
    %28 = vector.broadcast %27 : vector<8x1xf32> to vector<8x8xf32>
    %29 = arith.subf %25, %28 : vector<8x8xf32>
    %30 = math.exp %29 : vector<8x8xf32>
    %cst_15 = arith.constant dense<0.000000e+00> : vector<8xf32>
    %31 = vector.multi_reduction <add>, %30, %cst_15 [1] : vector<8x8xf32> to vector<8xf32>
    %32 = vector.shape_cast %31 : vector<8xf32> to vector<8x1xf32>
    %33 = tpu.reciprocal %32 {approx = true} : vector<8x1xf32> -> vector<8x1xf32>
    %34 = vector.broadcast %33 : vector<8x1xf32> to vector<8x8xf32>
    %35 = arith.mulf %30, %34 : vector<8x8xf32>
    %36 = arith.truncf %35 : vector<8x8xf32> to vector<8x8xbf16>
    %37 = vector.extract_strided_slice %20 {offsets = [0, 0], sizes = [8, 8], strides = [1, 1]} : vector<8x32xbf16> to vector<8x8xbf16>
    %cst_16 = arith.constant dense<0.000000e+00> : vector<8x8xf32>
    %38 = tpu.matmul %36, %37, %cst_16 {dimension_numbers = #tpu.dot_dimension_numbers<[1], [0], [0], [1], [0, 0, 1, 1], [], []>} : vector<8x8xbf16>, vector<8x8xbf16>, vector<8x8xf32> -> vector<8x8xf32>
    %39 = arith.truncf %38 : vector<8x8xf32> to vector<8x8xbf16>
    %c0_17 = arith.constant 0 : index
    %c0_18 = arith.constant 0 : index
    %c0_19 = arith.constant 0 : index
    %40 = vector.load %arg5[%c0_17, %c0_18, %c0_19] : memref<4x8x32xbf16, #tpu.memory_space<vmem>>, vector<1x8x32xbf16>
    %41 = vector.shape_cast %40 : vector<1x8x32xbf16> to vector<8x32xbf16>
    %cst_20 = arith.constant dense<0.000000e+00> : vector<8x32xf32>
    %42 = tpu.matmul %39, %41, %cst_20 {dimension_numbers = #tpu.dot_dimension_numbers<[1], [0], [0], [1], [0, 0, 1, 1], [], []>} : vector<8x8xbf16>, vector<8x32xbf16>, vector<8x32xf32> -> vector<8x32xf32>
    %43 = vector.extract_strided_slice %18 {offsets = [0, 8], sizes = [8, 8], strides = [1, 1]} : vector<8x32xbf16> to vector<8x8xbf16>
    %44 = vector.extract_strided_slice %19 {offsets = [0, 8], sizes = [8, 8], strides = [1, 1]} : vector<8x32xbf16> to vector<8x8xbf16>
    %cst_21 = arith.constant dense<0.000000e+00> : vector<8x8xf32>
    %45 = tpu.matmul %43, %44, %cst_21 {dimension_numbers = #tpu.dot_dimension_numbers<[1], [1], [0], [0], [0, 0, 1, 0], [], []>} : vector<8x8xbf16>, vector<8x8xbf16>, vector<8x8xf32> -> vector<8x8xf32>
    %46 = vector.broadcast %5 : vector<1x8xf32> to vector<8x8xf32>
    %47 = arith.addf %45, %46 : vector<8x8xf32>
    %cst_22 = arith.constant dense<0xFF800000> : vector<8xf32>
    %48 = vector.multi_reduction <maximumf>, %47, %cst_22 [1] : vector<8x8xf32> to vector<8xf32>
    %49 = vector.shape_cast %48 : vector<8xf32> to vector<8x1xf32>
    %50 = vector.broadcast %49 : vector<8x1xf32> to vector<8x8xf32>
    %51 = arith.subf %47, %50 : vector<8x8xf32>
    %52 = math.exp %51 : vector<8x8xf32>
    %cst_23 = arith.constant dense<0.000000e+00> : vector<8xf32>
    %53 = vector.multi_reduction <add>, %52, %cst_23 [1] : vector<8x8xf32> to vector<8xf32>
    %54 = vector.shape_cast %53 : vector<8xf32> to vector<8x1xf32>
    %55 = tpu.reciprocal %54 {approx = true} : vector<8x1xf32> -> vector<8x1xf32>
    %56 = vector.broadcast %55 : vector<8x1xf32> to vector<8x8xf32>
    %57 = arith.mulf %52, %56 : vector<8x8xf32>
    %58 = arith.truncf %57 : vector<8x8xf32> to vector<8x8xbf16>
    %59 = vector.extract_strided_slice %20 {offsets = [0, 8], sizes = [8, 8], strides = [1, 1]} : vector<8x32xbf16> to vector<8x8xbf16>
    %cst_24 = arith.constant dense<0.000000e+00> : vector<8x8xf32>
    %60 = tpu.matmul %58, %59, %cst_24 {dimension_numbers = #tpu.dot_dimension_numbers<[1], [0], [0], [1], [0, 0, 1, 1], [], []>} : vector<8x8xbf16>, vector<8x8xbf16>, vector<8x8xf32> -> vector<8x8xf32>
    %61 = arith.truncf %60 : vector<8x8xf32> to vector<8x8xbf16>
    %c1 = arith.constant 1 : index
    %c0_25 = arith.constant 0 : index
    %c0_26 = arith.constant 0 : index
    %62 = vector.load %arg5[%c1, %c0_25, %c0_26] : memref<4x8x32xbf16, #tpu.memory_space<vmem>>, vector<1x8x32xbf16>
    %63 = vector.shape_cast %62 : vector<1x8x32xbf16> to vector<8x32xbf16>
    %cst_27 = arith.constant dense<0.000000e+00> : vector<8x32xf32>
    %64 = tpu.matmul %61, %63, %cst_27 {dimension_numbers = #tpu.dot_dimension_numbers<[1], [0], [0], [1], [0, 0, 1, 1], [], []>} : vector<8x8xbf16>, vector<8x32xbf16>, vector<8x32xf32> -> vector<8x32xf32>
    %65 = arith.addf %42, %64 : vector<8x32xf32>
    %66 = vector.extract_strided_slice %18 {offsets = [0, 16], sizes = [8, 8], strides = [1, 1]} : vector<8x32xbf16> to vector<8x8xbf16>
    %67 = vector.extract_strided_slice %19 {offsets = [0, 16], sizes = [8, 8], strides = [1, 1]} : vector<8x32xbf16> to vector<8x8xbf16>
    %cst_28 = arith.constant dense<0.000000e+00> : vector<8x8xf32>
    %68 = tpu.matmul %66, %67, %cst_28 {dimension_numbers = #tpu.dot_dimension_numbers<[1], [1], [0], [0], [0, 0, 1, 0], [], []>} : vector<8x8xbf16>, vector<8x8xbf16>, vector<8x8xf32> -> vector<8x8xf32>
    %69 = vector.broadcast %5 : vector<1x8xf32> to vector<8x8xf32>
    %70 = arith.addf %68, %69 : vector<8x8xf32>
    %cst_29 = arith.constant dense<0xFF800000> : vector<8xf32>
    %71 = vector.multi_reduction <maximumf>, %70, %cst_29 [1] : vector<8x8xf32> to vector<8xf32>
    %72 = vector.shape_cast %71 : vector<8xf32> to vector<8x1xf32>
    %73 = vector.broadcast %72 : vector<8x1xf32> to vector<8x8xf32>
    %74 = arith.subf %70, %73 : vector<8x8xf32>
    %75 = math.exp %74 : vector<8x8xf32>
    %cst_30 = arith.constant dense<0.000000e+00> : vector<8xf32>
    %76 = vector.multi_reduction <add>, %75, %cst_30 [1] : vector<8x8xf32> to vector<8xf32>
    %77 = vector.shape_cast %76 : vector<8xf32> to vector<8x1xf32>
    %78 = tpu.reciprocal %77 {approx = true} : vector<8x1xf32> -> vector<8x1xf32>
    %79 = vector.broadcast %78 : vector<8x1xf32> to vector<8x8xf32>
    %80 = arith.mulf %75, %79 : vector<8x8xf32>
    %81 = arith.truncf %80 : vector<8x8xf32> to vector<8x8xbf16>
    %82 = vector.extract_strided_slice %20 {offsets = [0, 16], sizes = [8, 8], strides = [1, 1]} : vector<8x32xbf16> to vector<8x8xbf16>
    %cst_31 = arith.constant dense<0.000000e+00> : vector<8x8xf32>
    %83 = tpu.matmul %81, %82, %cst_31 {dimension_numbers = #tpu.dot_dimension_numbers<[1], [0], [0], [1], [0, 0, 1, 1], [], []>} : vector<8x8xbf16>, vector<8x8xbf16>, vector<8x8xf32> -> vector<8x8xf32>
    %84 = arith.truncf %83 : vector<8x8xf32> to vector<8x8xbf16>
    %c2 = arith.constant 2 : index
    %c0_32 = arith.constant 0 : index
    %c0_33 = arith.constant 0 : index
    %85 = vector.load %arg5[%c2, %c0_32, %c0_33] : memref<4x8x32xbf16, #tpu.memory_space<vmem>>, vector<1x8x32xbf16>
    %86 = vector.shape_cast %85 : vector<1x8x32xbf16> to vector<8x32xbf16>
    %cst_34 = arith.constant dense<0.000000e+00> : vector<8x32xf32>
    %87 = tpu.matmul %84, %86, %cst_34 {dimension_numbers = #tpu.dot_dimension_numbers<[1], [0], [0], [1], [0, 0, 1, 1], [], []>} : vector<8x8xbf16>, vector<8x32xbf16>, vector<8x32xf32> -> vector<8x32xf32>
    %88 = arith.addf %65, %87 : vector<8x32xf32>
    %89 = vector.extract_strided_slice %18 {offsets = [0, 24], sizes = [8, 8], strides = [1, 1]} : vector<8x32xbf16> to vector<8x8xbf16>
    %90 = vector.extract_strided_slice %19 {offsets = [0, 24], sizes = [8, 8], strides = [1, 1]} : vector<8x32xbf16> to vector<8x8xbf16>
    %cst_35 = arith.constant dense<0.000000e+00> : vector<8x8xf32>
    %91 = tpu.matmul %89, %90, %cst_35 {dimension_numbers = #tpu.dot_dimension_numbers<[1], [1], [0], [0], [0, 0, 1, 0], [], []>} : vector<8x8xbf16>, vector<8x8xbf16>, vector<8x8xf32> -> vector<8x8xf32>
    %92 = vector.broadcast %5 : vector<1x8xf32> to vector<8x8xf32>
    %93 = arith.addf %91, %92 : vector<8x8xf32>
    %cst_36 = arith.constant dense<0xFF800000> : vector<8xf32>
    %94 = vector.multi_reduction <maximumf>, %93, %cst_36 [1] : vector<8x8xf32> to vector<8xf32>
    %95 = vector.shape_cast %94 : vector<8xf32> to vector<8x1xf32>
    %96 = vector.broadcast %95 : vector<8x1xf32> to vector<8x8xf32>
    %97 = arith.subf %93, %96 : vector<8x8xf32>
    %98 = math.exp %97 : vector<8x8xf32>
    %cst_37 = arith.constant dense<0.000000e+00> : vector<8xf32>
    %99 = vector.multi_reduction <add>, %98, %cst_37 [1] : vector<8x8xf32> to vector<8xf32>
    %100 = vector.shape_cast %99 : vector<8xf32> to vector<8x1xf32>
    %101 = tpu.reciprocal %100 {approx = true} : vector<8x1xf32> -> vector<8x1xf32>
    %102 = vector.broadcast %101 : vector<8x1xf32> to vector<8x8xf32>
    %103 = arith.mulf %98, %102 : vector<8x8xf32>
    %104 = arith.truncf %103 : vector<8x8xf32> to vector<8x8xbf16>
    %105 = vector.extract_strided_slice %20 {offsets = [0, 24], sizes = [8, 8], strides = [1, 1]} : vector<8x32xbf16> to vector<8x8xbf16>
    %cst_38 = arith.constant dense<0.000000e+00> : vector<8x8xf32>
    %106 = tpu.matmul %104, %105, %cst_38 {dimension_numbers = #tpu.dot_dimension_numbers<[1], [0], [0], [1], [0, 0, 1, 1], [], []>} : vector<8x8xbf16>, vector<8x8xbf16>, vector<8x8xf32> -> vector<8x8xf32>
    %107 = arith.truncf %106 : vector<8x8xf32> to vector<8x8xbf16>
    %c3 = arith.constant 3 : index
    %c0_39 = arith.constant 0 : index
    %c0_40 = arith.constant 0 : index
    %108 = vector.load %arg5[%c3, %c0_39, %c0_40] : memref<4x8x32xbf16, #tpu.memory_space<vmem>>, vector<1x8x32xbf16>
    %109 = vector.shape_cast %108 : vector<1x8x32xbf16> to vector<8x32xbf16>
    %cst_41 = arith.constant dense<0.000000e+00> : vector<8x32xf32>
    %110 = tpu.matmul %107, %109, %cst_41 {dimension_numbers = #tpu.dot_dimension_numbers<[1], [0], [0], [1], [0, 0, 1, 1], [], []>} : vector<8x8xbf16>, vector<8x32xbf16>, vector<8x32xf32> -> vector<8x32xf32>
    %111 = arith.addf %88, %110 : vector<8x32xf32>
    %112 = vector.broadcast %15 : vector<1x32xf32> to vector<8x32xf32>
    %113 = arith.addf %111, %112 : vector<8x32xf32>
    %114 = arith.addf %1, %113 : vector<8x32xf32>
    %c0_42 = arith.constant 0 : index
    %c0_43 = arith.constant 0 : index
    %115 = vector.load %arg11[%c0_42, %c0_43] : memref<1x32xf32, #tpu.memory_space<vmem>>, vector<1x32xf32>
    %c0_44 = arith.constant 0 : index
    %c0_45 = arith.constant 0 : index
    %116 = vector.load %arg12[%c0_44, %c0_45] : memref<1x32xf32, #tpu.memory_space<vmem>>, vector<1x32xf32>
    %cst_46 = arith.constant dense<0.000000e+00> : vector<8xf32>
    %117 = vector.multi_reduction <add>, %114, %cst_46 [1] : vector<8x32xf32> to vector<8xf32>
    %118 = vector.shape_cast %117 : vector<8xf32> to vector<8x1xf32>
    %cst_47 = arith.constant 3.200000e+01 : f32
    %119 = vector.broadcast %cst_47 : f32 to vector<8x1xf32>
    %120 = arith.divf %118, %119 : vector<8x1xf32>
    %121 = vector.broadcast %120 : vector<8x1xf32> to vector<8x32xf32>
    %122 = arith.subf %114, %121 : vector<8x32xf32>
    %123 = arith.mulf %122, %122 : vector<8x32xf32>
    %cst_48 = arith.constant dense<0.000000e+00> : vector<8xf32>
    %124 = vector.multi_reduction <add>, %123, %cst_48 [1] : vector<8x32xf32> to vector<8xf32>
    %125 = vector.shape_cast %124 : vector<8xf32> to vector<8x1xf32>
    %cst_49 = arith.constant 3.200000e+01 : f32
    %126 = vector.broadcast %cst_49 : f32 to vector<8x1xf32>
    %127 = arith.divf %125, %126 : vector<8x1xf32>
    %128 = vector.broadcast %120 : vector<8x1xf32> to vector<8x32xf32>
    %129 = arith.subf %114, %128 : vector<8x32xf32>
    %cst_50 = arith.constant 9.99999997E-7 : f32
    %130 = vector.broadcast %cst_50 : f32 to vector<8x1xf32>
    %131 = arith.addf %127, %130 : vector<8x1xf32>
    %132 = math.rsqrt %131 : vector<8x1xf32>
    %133 = vector.broadcast %132 : vector<8x1xf32> to vector<8x32xf32>
    %134 = arith.mulf %129, %133 : vector<8x32xf32>
    %135 = vector.broadcast %115 : vector<1x32xf32> to vector<8x32xf32>
    %136 = arith.mulf %134, %135 : vector<8x32xf32>
    %137 = vector.broadcast %116 : vector<1x32xf32> to vector<8x32xf32>
    %138 = arith.addf %136, %137 : vector<8x32xf32>
    %139 = arith.truncf %138 : vector<8x32xf32> to vector<8x32xbf16>
    %c0_51 = arith.constant 0 : index
    %c0_52 = arith.constant 0 : index
    %140 = vector.load %arg7[%c0_51, %c0_52] : memref<32x64xbf16, #tpu.memory_space<vmem>>, vector<32x64xbf16>
    %cst_53 = arith.constant dense<0.000000e+00> : vector<8x64xf32>
    %141 = tpu.matmul %139, %140, %cst_53 {dimension_numbers = #tpu.dot_dimension_numbers<[1], [0], [0], [1], [0, 0, 1, 1], [], []>} : vector<8x32xbf16>, vector<32x64xbf16>, vector<8x64xf32> -> vector<8x64xf32>
    %c0_54 = arith.constant 0 : index
    %c0_55 = arith.constant 0 : index
    %142 = vector.load %arg8[%c0_54, %c0_55] : memref<1x64xf32, #tpu.memory_space<vmem>>, vector<1x64xf32>
    %143 = vector.broadcast %142 : vector<1x64xf32> to vector<8x64xf32>
    %144 = arith.addf %141, %143 : vector<8x64xf32>
    %cst_56 = arith.constant 0.000000e+00 : f32
    %145 = vector.broadcast %cst_56 : f32 to vector<8x64xf32>
    %146 = arith.maximumf %144, %145 : vector<8x64xf32>
    %147 = arith.truncf %146 : vector<8x64xf32> to vector<8x64xbf16>
    %c0_57 = arith.constant 0 : index
    %c0_58 = arith.constant 0 : index
    %148 = vector.load %arg9[%c0_57, %c0_58] : memref<64x32xbf16, #tpu.memory_space<vmem>>, vector<64x32xbf16>
    %cst_59 = arith.constant dense<0.000000e+00> : vector<8x32xf32>
    %149 = tpu.matmul %147, %148, %cst_59 {dimension_numbers = #tpu.dot_dimension_numbers<[1], [0], [0], [1], [0, 0, 1, 1], [], []>} : vector<8x64xbf16>, vector<64x32xbf16>, vector<8x32xf32> -> vector<8x32xf32>
    %c0_60 = arith.constant 0 : index
    %c0_61 = arith.constant 0 : index
    %150 = vector.load %arg10[%c0_60, %c0_61] : memref<1x32xf32, #tpu.memory_space<vmem>>, vector<1x32xf32>
    %151 = vector.broadcast %150 : vector<1x32xf32> to vector<8x32xf32>
    %152 = arith.addf %149, %151 : vector<8x32xf32>
    %153 = arith.addf %138, %152 : vector<8x32xf32>
    %c0_62 = arith.constant 0 : index
    %c0_63 = arith.constant 0 : index
    %154 = vector.load %arg13[%c0_62, %c0_63] : memref<1x32xf32, #tpu.memory_space<vmem>>, vector<1x32xf32>
    %c0_64 = arith.constant 0 : index
    %c0_65 = arith.constant 0 : index
    %155 = vector.load %arg14[%c0_64, %c0_65] : memref<1x32xf32, #tpu.memory_space<vmem>>, vector<1x32xf32>
    %cst_66 = arith.constant dense<0.000000e+00> : vector<8xf32>
    %156 = vector.multi_reduction <add>, %153, %cst_66 [1] : vector<8x32xf32> to vector<8xf32>
    %157 = vector.shape_cast %156 : vector<8xf32> to vector<8x1xf32>
    %cst_67 = arith.constant 3.200000e+01 : f32
    %158 = vector.broadcast %cst_67 : f32 to vector<8x1xf32>
    %159 = arith.divf %157, %158 : vector<8x1xf32>
    %160 = vector.broadcast %159 : vector<8x1xf32> to vector<8x32xf32>
    %161 = arith.subf %153, %160 : vector<8x32xf32>
    %162 = arith.mulf %161, %161 : vector<8x32xf32>
    %cst_68 = arith.constant dense<0.000000e+00> : vector<8xf32>
    %163 = vector.multi_reduction <add>, %162, %cst_68 [1] : vector<8x32xf32> to vector<8xf32>
    %164 = vector.shape_cast %163 : vector<8xf32> to vector<8x1xf32>
    %cst_69 = arith.constant 3.200000e+01 : f32
    %165 = vector.broadcast %cst_69 : f32 to vector<8x1xf32>
    %166 = arith.divf %164, %165 : vector<8x1xf32>
    %167 = vector.broadcast %159 : vector<8x1xf32> to vector<8x32xf32>
    %168 = arith.subf %153, %167 : vector<8x32xf32>
    %cst_70 = arith.constant 9.99999997E-7 : f32
    %169 = vector.broadcast %cst_70 : f32 to vector<8x1xf32>
    %170 = arith.addf %166, %169 : vector<8x1xf32>
    %171 = math.rsqrt %170 : vector<8x1xf32>
    %172 = vector.broadcast %171 : vector<8x1xf32> to vector<8x32xf32>
    %173 = arith.mulf %168, %172 : vector<8x32xf32>
    %174 = vector.broadcast %154 : vector<1x32xf32> to vector<8x32xf32>
    %175 = arith.mulf %173, %174 : vector<8x32xf32>
    %176 = vector.broadcast %155 : vector<1x32xf32> to vector<8x32xf32>
    %177 = arith.addf %175, %176 : vector<8x32xf32>
    %c0_71 = arith.constant 0 : index
    %c0_72 = arith.constant 0 : index
    %c0_73 = arith.constant 0 : index
    %178 = vector.load %arg15[%c0_71, %c0_72, %c0_73] : memref<1x8x32xf32, #tpu.memory_space<vmem>>, vector<1x8x32xf32>
    %179 = vector.shape_cast %178 : vector<1x8x32xf32> to vector<8x32xf32>
    %180 = vector.shape_cast %177 : vector<8x32xf32> to vector<1x8x32xf32>
    tpu.vector_store %arg15[%c0_71, %c0_72, %c0_73], %180 {strides = array<i32>} : memref<1x8x32xf32, #tpu.memory_space<vmem>>, vector<1x8x32xf32>,
    return
  }
  func.func @transform_0(%arg0: i32) -> (i32, i32, i32) {
    %c0_i32 = arith.constant 0 : i32
    %c0_i32_0 = arith.constant 0 : i32
    %c0_i32_1 = arith.constant 0 : i32
    return %arg0, %c0_i32, %c0_i32_0 : i32, i32, i32
  }
  func.func @transform_1(%arg0: i32) -> (i32, i32, i32) {
    %c0_i32 = arith.constant 0 : i32
    %c0_i32_0 = arith.constant 0 : i32
    %c0_i32_1 = arith.constant 0 : i32
    return %arg0, %c0_i32, %c0_i32_0 : i32, i32, i32
  }
  func.func @transform_2(%arg0: i32) -> (i32, i32) {
    %c0_i32 = arith.constant 0 : i32
    %c0_i32_0 = arith.constant 0 : i32
    %c0_i32_1 = arith.constant 0 : i32
    return %c0_i32, %c0_i32_0 : i32, i32
  }
  func.func @transform_3(%arg0: i32) -> (i32, i32) {
    %c0_i32 = arith.constant 0 : i32
    %c0_i32_0 = arith.constant 0 : i32
    %c0_i32_1 = arith.constant 0 : i32
    return %c0_i32, %c0_i32_0 : i32, i32
  }
  func.func @transform_4(%arg0: i32) -> (i32, i32, i32) {
    %c0_i32 = arith.constant 0 : i32
    %c0_i32_0 = arith.constant 0 : i32
    %c0_i32_1 = arith.constant 0 : i32
    %c0_i32_2 = arith.constant 0 : i32
    return %c0_i32, %c0_i32_0, %c0_i32_1 : i32, i32, i32
  }
  func.func @transform_5(%arg0: i32) -> (i32, i32) {
    %c0_i32 = arith.constant 0 : i32
    %c0_i32_0 = arith.constant 0 : i32
    %c0_i32_1 = arith.constant 0 : i32
    return %c0_i32, %c0_i32_0 : i32, i32
  }
  func.func @transform_6(%arg0: i32) -> (i32, i32) {
    %c0_i32 = arith.constant 0 : i32
    %c0_i32_0 = arith.constant 0 : i32
    %c0_i32_1 = arith.constant 0 : i32
    return %c0_i32, %c0_i32_0 : i32, i32
  }
  func.func @transform_7(%arg0: i32) -> (i32, i32) {
    %c0_i32 = arith.constant 0 : i32
    %c0_i32_0 = arith.constant 0 : i32
    %c0_i32_1 = arith.constant 0 : i32
    return %c0_i32, %c0_i32_0 : i32, i32
  }
  func.func @transform_8(%arg0: i32) -> (i32, i32) {
    %c0_i32 = arith.constant 0 : i32
    %c0_i32_0 = arith.constant 0 : i32
    %c0_i32_1 = arith.constant 0 : i32
    return %c0_i32, %c0_i32_0 : i32, i32
  }
  func.func @transform_9(%arg0: i32) -> (i32, i32) {
    %c0_i32 = arith.constant 0 : i32
    %c0_i32_0 = arith.constant 0 : i32
    %c0_i32_1 = arith.constant 0 : i32
    return %c0_i32, %c0_i32_0 : i32, i32
  }
  func.func @transform_10(%arg0: i32) -> (i32, i32) {
    %c0_i32 = arith.constant 0 : i32
    %c0_i32_0 = arith.constant 0 : i32
    %c0_i32_1 = arith.constant 0 : i32
    return %c0_i32, %c0_i32_0 : i32, i32
  }
  func.func @transform_11(%arg0: i32) -> (i32, i32) {
    %c0_i32 = arith.constant 0 : i32
    %c0_i32_0 = arith.constant 0 : i32
    %c0_i32_1 = arith.constant 0 : i32
    return %c0_i32, %c0_i32_0 : i32, i32
  }
  func.func @transform_12(%arg0: i32) -> (i32, i32) {
    %c0_i32 = arith.constant 0 : i32
    %c0_i32_0 = arith.constant 0 : i32
    %c0_i32_1 = arith.constant 0 : i32
    return %c0_i32, %c0_i32_0 : i32, i32
  }
  func.func @transform_13(%arg0: i32) -> (i32, i32) {
    %c0_i32 = arith.constant 0 : i32
    %c0_i32_0 = arith.constant 0 : i32
    %c0_i32_1 = arith.constant 0 : i32
    return %c0_i32, %c0_i32_0 : i32, i32
  }
  func.func @transform_14(%arg0: i32) -> (i32, i32, i32) {
    %c0_i32 = arith.constant 0 : i32
    %c0_i32_0 = arith.constant 0 : i32
    %c0_i32_1 = arith.constant 0 : i32
    return %arg0, %c0_i32, %c0_i32_0 : i32, i32, i32
  }
}

</mosaic_0001>

<bundles_post_ra>
// kernel: tpu_custom_call.1
= control target key start
LH: loop header
LB: loop body
LE: loop exit
PB: predicated region body
PF: predicated region fallthrough
CT: control target
= control target key end

     0   :  { %s3479_s0 = inlined_call_operand.hbm [shape: f32[2,8,32], index: 0, kind: input, shape index: {}]   ;;  %s3480_s1 = inlined_call_operand.hbm [shape: f32[2,1,8], index: 1, kind: input, shape index: {}]   ;;  %s3481_s2 = inlined_call_operand.hbm [shape: bf16[32,96], index: 2, kind: input, shape index: {}]   ;;  %s3482_s3 = inlined_call_operand.hbm [shape: f32[1,96], index: 3, kind: input, shape index: {}]   ;;  %s3483_s4 = inlined_call_operand.hbm [shape: bf16[4,8,32], index: 4, kind: input, shape index: {}]   ;;  %s3484_s5 = inlined_call_operand.hbm [shape: f32[1,32], index: 5, kind: input, shape index: {}]   ;;  %s3485_s6 = inlined_call_operand.hbm [shape: bf16[32,64], index: 6, kind: input, shape index: {}]   ;;  %s3486_s7 = inlined_call_operand.hbm [shape: f32[1,64], index: 7, kind: input, shape index: {}]   ;;  %s3487_s8 = inlined_call_operand.hbm [shape: bf16[64,32], index: 8, kind: input, shape index: {}]   ;;  %s3488_s9 = inlined_call_operand.hbm [shape: f32[1,32], index: 9, kind: input, shape index: {}]   ;;  %s3489_s10 = inlined_call_operand.hbm [shape: f32[1,32], index: 10, kind: input, shape index: {}]   ;;  %s3490_s11 = inlined_call_operand.hbm [shape: f32[1,32], index: 11, kind: input, shape index: {}]   ;;  %s3491_s12 = inlined_call_operand.hbm [shape: f32[1,32], index: 12, kind: input, shape index: {}]   ;;  %s3492_s13 = inlined_call_operand.hbm [shape: f32[1,32], index: 13, kind: input, shape index: {}]   ;;  %s3493_s14 = inlined_call_operand.hbm [shape: f32[2,8,32], index: 14, kind: output, shape index: {}]  }
   0x1   :  { %3507 = sst [smem:[#allocation39_spill]] %s3479_s0 }
   0x2   :  { %3508 = sst [smem:[#allocation40_spill]] %s3480_s1 }
   0x3   :  { %3509 = sst [smem:[#allocation41_spill]] %s3481_s2 }
   0x4   :  { %3510 = sst [smem:[#allocation42_spill]] %s3482_s3 }
   0x5   :  { %3511 = sst [smem:[#allocation43_spill]] %s3483_s4 }
   0x6   :  { %3512 = sst [smem:[#allocation44_spill]] %s3484_s5 }
   0x7   :  { %3513 = sst [smem:[#allocation45_spill]] %s3485_s6 }
   0x8   :  { %3514 = sst [smem:[#allocation46_spill]] %s3493_s14 }
   0x9   :  { %19 = vsyncpa [#allocation3], 0 }
   0xa   :  { %21 = vsyncpa [#allocation3 + $0x1], 0 }
   0xb   :  { %22 = vsyncpa [#allocation6], 0 }
   0xc   :  { %24 = vsyncpa [#allocation6 + $0x1], 0 }
   0xd   :  { %25 = vsyncpa [#allocation9], 0 }
   0xe   :  { %26 = vsyncpa [#allocation12], 0 }
   0xf   :  { %27 = vsyncpa [#allocation15], 0 }
  0x10   :  { %28 = vsyncpa [#allocation18], 0 }
  0x11   :  { %29 = vsyncpa [#allocation21], 0 }
  0x12   :  { %30 = vsyncpa [#allocation24], 0 }
  0x13   :  { %31 = vsyncpa [#allocation4], 0 }
  0x14   :  { %33 = vsyncpa [#allocation4 + $0x1], 0  ;;  %s2854_s29 = smov 0   ;;  %s2856_s30 = smov 0  }
  0x15   :  { %s2858_s15 = smov 0   ;;  %s2860_s16 = smov 0  }
  0x16 LB: > { %3515 = sst [smem:[#allocation36_spill]] %s2735_s29  ;;  %s2749_s17 = smov [#allocation7]   ;;  %s2747_s16 = sphi %s2860_s16, %s3565_s16   ;;  %s2743_s15 = sphi %s2858_s15, %s3564_s15   ;;  %s2739_s30 = sphi %s2856_s30, %s3563_s30   ;;  %s2735_s29 = sphi %s2854_s29, %s3562_s29  }
  0x17   : > { %s386_s18 = sshll.u32 %s2749_s17, 4  ;;  %s2875_s19 = sadd.s32 4294967295, %s2747_s16   ;;  %s2880_s18 = int_to_ptr.vmem [resolvable:$true] %s386_s18 }
  0x18   : > { %3516 = sst [smem:[#allocation37_spill]] %s2875_s19  ;;  %p1836_p0 = scmp.ge.s32.totalorder %s2747_s16, 1 }
  0x19   : > { %p3503_p1 = scmp.eq.s32.totalorder %s2875_s19, 0  ;;  %p374_p2 = scmp.lt.s32.totalorder %s2747_s16, 3 }
  0x1a   : > { %s2750_s21 = smov [#allocation8]   ;;  %s2751_s24 = smov [#allocation11]  }
  0x1b   : > { %p2882_p3 = pnand %p1836_p0, %p374_p2  ;;  %s400_s22 = sshll.u32 %s2750_s21, 4  ;;  %s2895_s22 = int_to_ptr.vmem [resolvable:$true] %s400_s22 }
  0x1c   : > { %s424_s25 = sshll.u32 %s2751_s24, 4  ;;  %s3520_s2 = sld [smem:[#allocation41_spill]]  ;;  %s2897_s25 = int_to_ptr.vmem [resolvable:$true] %s424_s25 }
  0x1d   : > { %s3517_s20 = scalar_select %p2882_p3, 1, 0 }
  0x1e   : > { %p2092_p5 = pneg %p2882_p3 }
  0x1f   : > { %3518 = sst [smem:[#allocation38_spill]] %s3517_s20 }
  0x20   : > { %p2891_p6 = pnand %p2092_p5, %p3503_p1 }
  0x22   : > { %s2253_s28 = scalar_lea.hbm %s3520_s2, 256  ;;  %p2907_p8 = pneg %p2891_p6 }
  0x23   : > { %p2254_p7 = scmp.ne.s32.totalorder %s3520_s2, %s2253_s28  ;;  %p2260_p11 = scmp.lt.u32.totalorder %s2253_s28, %s3520_s2 }
  0x25   : > { %p2256_p9 = pnand %p2907_p8, %p2254_p7 }
  0x27   : > { %p2257_p10 = pneg %p2256_p9 }
  0x29   : > { %p2262_p12 = pnand %p2260_p11, %p2257_p10 }
  0x2b   : > { %2265 = shalt.err (!%p2262_p12)
}
  0x2c   : > { %s2266_s14 = scalar_lea.vmem %s2880_s18, 256  ;;  %p2274_p5 = scmp.lt.s32.totalorder %s2880_s18, %s2880_s18 }
  0x2d   : > { %p2267_p13 = scmp.ne.s32.totalorder %s2880_s18, %s2266_s14  ;;  %p2275_p4 = scmp.lt.s32.totalorder %s2266_s14, %s2266_s14 }
  0x2f   : > { %p2269_p0 = pnand %p2267_p13, %p2907_p8  ;;  %p2276_p7 = por %p2275_p4, %p2274_p5 }
  0x31   : > { %p2270_p2 = pneg %p2269_p0 }
  0x33   : > { %p2277_p9 = pnand %p2276_p7, %p2270_p2 }
  0x35   : > { %2280 = shalt.err (!%p2277_p9)
}
  0x36   : > { %s3501_s26 = smov 64   ;;  %s2753_s20 = smov 4  }
  0x37   : > { %2095 = dma.hbm_to_vmem [thread:$0]  (!%p2891_p6), %s3520_s2, 256, %s2880_s18, [#allocation6], %s3501_s26, %s3501_s26, %s2753_s20  }
  0x38   : > { %s3522_s3 = sld [smem:[#allocation42_spill]] }
  0x3e   : > { %s2281_s14 = scalar_lea.hbm %s3522_s3, 16 }
  0x3f   : > { %p2282_p4 = scmp.ne.s32.totalorder %s3522_s3, %s2281_s14  ;;  %p2288_p12 = scmp.lt.u32.totalorder %s2281_s14, %s3522_s3 }
  0x41   : > { %p2284_p10 = pnand %p2282_p4, %p2907_p8 }
  0x43   : > { %p2285_p11 = pneg %p2284_p10 }
  0x45   : > { %p2290_p13 = pnand %p2288_p12, %p2285_p11 }
  0x47   : > { %2293 = shalt.err (!%p2290_p13)
}
  0x48   : > { %s2294_s18 = scalar_lea.vmem %s2895_s22, 16  ;;  %s2301_s0 = scalar_lea.vmem %s2895_s22, 32 }
  0x49   : > { %p2295_p0 = scmp.ne.s32.totalorder %s2895_s22, %s2294_s18  ;;  %p2302_p7 = scmp.lt.s32.totalorder %s2895_s22, %s2895_s22 }
  0x4a   : > { %p2303_p9 = scmp.lt.s32.totalorder %s2301_s0, %s2294_s18 }
  0x4b   : > { %p2297_p2 = pnand %p2295_p0, %p2907_p8 }
  0x4c   : > { %p2304_p4 = por %p2303_p9, %p2302_p7 }
  0x4d   : > { %p2298_p5 = pneg %p2297_p2 }
  0x4f   : > { %p2305_p10 = pnand %p2304_p4, %p2298_p5 }
  0x51   : > { %2308 = shalt.err (!%p2305_p10)
}
  0x52   : > { %2098 = dma.hbm_to_vmem [thread:$0]  (!%p2891_p6), %s3522_s3, 16, %s2895_s22, [#allocation9]  }
  0x53   : > { %s3523_s5 = sld [smem:[#allocation44_spill]] }
  0x59   : > { %s2309_s28 = scalar_lea.hbm %s3523_s5, 16 }
  0x5a   : > { %p2310_p11 = scmp.ne.s32.totalorder %s3523_s5, %s2309_s28  ;;  %p2316_p0 = scmp.lt.u32.totalorder %s2309_s28, %s3523_s5 }
  0x5c   : > { %p2312_p12 = pnand %p2310_p11, %p2907_p8 }
  0x5e   : > { %p2313_p13 = pneg %p2312_p12 }
  0x60   : > { %p2318_p2 = pnand %p2316_p0, %p2313_p13 }
  0x62   : > { %2321 = shalt.err (!%p2318_p2)
}
  0x63   : > { %s2322_s22 = scalar_lea.vmem %s2897_s25, 16  ;;  %s2329_s0 = scalar_lea.vmem %s2897_s25, 32 }
  0x64   : > { %p2323_p5 = scmp.ne.s32.totalorder %s2897_s25, %s2322_s22  ;;  %p2330_p4 = scmp.lt.s32.totalorder %s2897_s25, %s2897_s25 }
  0x65   : > { %p2331_p10 = scmp.lt.s32.totalorder %s2329_s0, %s2322_s22 }
  0x66   : > { %p2325_p7 = pnand %p2323_p5, %p2907_p8 }
  0x67   : > { %p2332_p11 = por %p2331_p10, %p2330_p4 }
  0x68   : > { %p2326_p9 = pneg %p2325_p7 }
  0x6a   : > { %p2333_p12 = pnand %p2332_p11, %p2326_p9 }
  0x6c   : > { %2336 = shalt.err (!%p2333_p12)
}
  0x6d   : > { %2104 = dma.hbm_to_vmem [thread:$0]  (!%p2891_p6), %s3523_s5, 16, %s2897_s25, [#allocation12]  }
  0x6e   : > { %s2754_s19 = smov [#allocation14]   ;;  %s2755_s28 = smov [#allocation17]  }
  0x6f   : > { %s448_s27 = sshll.u32 %s2754_s19, 4  ;;  %s472_s17 = sshll.u32 %s2755_s28, 4  ;;  %s449_s27 = int_to_ptr.vmem [resolvable:$true] %s448_s27  ;;  %s473_s17 = int_to_ptr.vmem [resolvable:$true] %s472_s17 }
  0x70   : > { %s2337_s18 = scalar_lea.hbm %s3486_s7, 16 }
  0x71   : > { %p2338_p13 = scmp.ne.s32.totalorder %s3486_s7, %s2337_s18  ;;  %p2344_p5 = scmp.lt.u32.totalorder %s2337_s18, %s3486_s7 }
  0x73   : > { %p2340_p0 = pnand %p2338_p13, %p2907_p8 }
  0x75   : > { %p2341_p2 = pneg %p2340_p0 }
  0x77   : > { %p2346_p7 = pnand %p2344_p5, %p2341_p2 }
  0x79   : > { %2349 = shalt.err (!%p2346_p7)
}
  0x7a   : > { %s2350_s25 = scalar_lea.vmem %s449_s27, 16  ;;  %s2357_s29 = scalar_lea.vmem %s449_s27, 32 }
  0x7b   : > { %p2351_p9 = scmp.ne.s32.totalorder %s449_s27, %s2350_s25  ;;  %p2358_p11 = scmp.lt.s32.totalorder %s449_s27, %s449_s27 }
  0x7c   : > { %p2359_p12 = scmp.lt.s32.totalorder %s2357_s29, %s2350_s25 }
  0x7d   : > { %p2353_p4 = pnand %p2351_p9, %p2907_p8 }
  0x7e   : > { %p2360_p1 = por %p2359_p12, %p2358_p11 }
  0x7f   : > { %p2354_p10 = pneg %p2353_p4 }
  0x81   : > { %p2361_p3 = pnand %p2360_p1, %p2354_p10 }
  0x83   : > { %2364 = shalt.err (!%p2361_p3)
}
  0x84   : > { %2110 = dma.hbm_to_vmem [thread:$0]  (!%p2891_p6), %s3486_s7, 16, %s449_s27, [#allocation15]  }
  0x85   : > { %s2365_s14 = scalar_lea.hbm %s3488_s9, 16 }
  0x86   : > { %p2366_p13 = scmp.ne.s32.totalorder %s3488_s9, %s2365_s14  ;;  %p2372_p3 = scmp.lt.u32.totalorder %s2365_s14, %s3488_s9 }
  0x88   : > { %p2368_p0 = pnand %p2366_p13, %p2907_p8 }
  0x8a   : > { %p2369_p1 = pneg %p2368_p0 }
  0x8c   : > { %p2374_p2 = pnand %p2372_p3, %p2369_p1 }
  0x8e   : > { %2377 = shalt.err (!%p2374_p2)
}
  0x8f   : > { %s2378_s25 = scalar_lea.vmem %s473_s17, 16  ;;  %s2385_s27 = scalar_lea.vmem %s473_s17, 32 }
  0x90   : > { %p2379_p5 = scmp.ne.s32.totalorder %s473_s17, %s2378_s25  ;;  %p2386_p4 = scmp.lt.s32.totalorder %s473_s17, %s473_s17 }
  0x91   : > { %p2387_p10 = scmp.lt.s32.totalorder %s2385_s27, %s2378_s25 }
  0x92   : > { %p2381_p7 = pnand %p2379_p5, %p2907_p8 }
  0x93   : > { %p2388_p11 = por %p2387_p10, %p2386_p4 }
  0x94   : > { %p2382_p9 = pneg %p2381_p7 }
  0x96   : > { %p2389_p12 = pnand %p2388_p11, %p2382_p9 }
  0x98   : > { %2392 = shalt.err (!%p2389_p12)
}
  0x99   : > { %2116 = dma.hbm_to_vmem [thread:$0]  (!%p2891_p6), %s3488_s9, 16, %s473_s17, [#allocation18]  }
  0x9a   : > { %s2756_s28 = smov [#allocation20]   ;;  %s2757_s24 = smov [#allocation10]  }
  0x9b   : > { %s494_s26 = sshll.u32 %s2756_s28, 4  ;;  %s410_s14 = sshll.u32 %s2757_s24, 4  ;;  %s495_s26 = int_to_ptr.vmem [resolvable:$true] %s494_s26  ;;  %s411_s14 = int_to_ptr.vmem [resolvable:$true] %s410_s14 }
  0x9c   : > { %s2393_s0 = scalar_lea.hbm %s3490_s11, 16 }
  0x9d   : > { %p2394_p13 = scmp.ne.s32.totalorder %s3490_s11, %s2393_s0  ;;  %p2400_p3 = scmp.lt.u32.totalorder %s2393_s0, %s3490_s11 }
  0x9f   : > { %p2396_p0 = pnand %p2394_p13, %p2907_p8 }
  0xa1   : > { %p2397_p1 = pneg %p2396_p0 }
  0xa3   : > { %p2402_p2 = pnand %p2400_p3, %p2397_p1 }
  0xa5   : > { %2405 = shalt.err (!%p2402_p2)
}
  0xa6   : > { %s2406_s17 = scalar_lea.vmem %s495_s26, 16  ;;  %s2413_s19 = scalar_lea.vmem %s495_s26, 32 }
  0xa7   : > { %p2407_p5 = scmp.ne.s32.totalorder %s495_s26, %s2406_s17  ;;  %p2414_p4 = scmp.lt.s32.totalorder %s495_s26, %s495_s26 }
  0xa8   : > { %p2415_p10 = scmp.lt.s32.totalorder %s2413_s19, %s2406_s17 }
  0xa9   : > { %p2409_p7 = pnand %p2407_p5, %p2907_p8 }
  0xaa   : > { %p2416_p11 = por %p2415_p10, %p2414_p4 }
  0xab   : > { %p2410_p9 = pneg %p2409_p7 }
  0xad   : > { %p2417_p12 = pnand %p2416_p11, %p2410_p9 }
  0xaf   : > { %2420 = shalt.err (!%p2417_p12)
}
  0xb0   : > { %2122 = dma.hbm_to_vmem [thread:$0]  (!%p2891_p6), %s3490_s11, 16, %s495_s26, [#allocation21]  }
  0xb1   : > { %s3524_s4 = sld [smem:[#allocation43_spill]] }
  0xb7   : > { %s2421_s0 = scalar_lea.hbm %s3524_s4, 256 }
  0xb8   : > { %p2422_p13 = scmp.ne.s32.totalorder %s3524_s4, %s2421_s0  ;;  %p2428_p3 = scmp.lt.u32.totalorder %s2421_s0, %s3524_s4 }
  0xba   : > { %p2424_p0 = pnand %p2422_p13, %p2907_p8 }
  0xbc   : > { %p2425_p1 = pneg %p2424_p0 }
  0xbe   : > { %p2430_p2 = pnand %p2428_p3, %p2425_p1 }
  0xc0   : > { %2433 = shalt.err (!%p2430_p2)
}
  0xc1   : > { %s2434_s17 = scalar_lea.vmem %s411_s14, 256  ;;  %p2442_p4 = scmp.lt.s32.totalorder %s411_s14, %s411_s14 }
  0xc2   : > { %p2435_p5 = scmp.ne.s32.totalorder %s411_s14, %s2434_s17  ;;  %p2443_p10 = scmp.lt.s32.totalorder %s2434_s17, %s2434_s17 }
  0xc4   : > { %p2437_p7 = pnand %p2435_p5, %p2907_p8  ;;  %p2444_p11 = por %p2443_p10, %p2442_p4 }
  0xc6   : > { %p2438_p9 = pneg %p2437_p7 }
  0xc8   : > { %p2445_p12 = pnand %p2444_p11, %p2438_p9 }
  0xca   : > { %2448 = shalt.err (!%p2445_p12)
}
  0xcb   : > { %s3525_s26 = smov 64   ;;  %s2758_s24 = smov [#allocation13]  }
  0xcc   : > { %2101 = dma.hbm_to_vmem [thread:$0]  (!%p2891_p6), %s3524_s4, 256, %s411_s14, [#allocation9], %s3525_s26, %s3525_s26, %s2753_s20  }
  0xcd   : > { %s434_s18 = sshll.u32 %s2758_s24, 4  ;;  %s2759_s22 = smov [#allocation16]   ;;  %s435_s18 = int_to_ptr.vmem [resolvable:$true] %s434_s18 }
  0xce   : > { %s458_s0 = sshll.u32 %s2759_s22, 4  ;;  %s3526_s6 = sld [smem:[#allocation45_spill]]  ;;  %s459_s0 = int_to_ptr.vmem [resolvable:$true] %s458_s0 }
  0xd4   : > { %s2449_s27 = scalar_lea.hbm %s3526_s6, 256 }
  0xd5   : > { %p2450_p13 = scmp.ne.s32.totalorder %s3526_s6, %s2449_s27  ;;  %p2456_p3 = scmp.lt.u32.totalorder %s2449_s27, %s3526_s6 }
  0xd7   : > { %p2452_p0 = pnand %p2450_p13, %p2907_p8 }
  0xd9   : > { %p2453_p1 = pneg %p2452_p0 }
  0xdb   : > { %p2458_p2 = pnand %p2456_p3, %p2453_p1 }
  0xdd   : > { %2461 = shalt.err (!%p2458_p2)
}
  0xde   : > { %s2462_s14 = scalar_lea.vmem %s435_s18, 256  ;;  %p2470_p4 = scmp.lt.s32.totalorder %s435_s18, %s435_s18 }
  0xdf   : > { %p2463_p5 = scmp.ne.s32.totalorder %s435_s18, %s2462_s14  ;;  %p2471_p10 = scmp.lt.s32.totalorder %s2462_s14, %s2462_s14 }
  0xe1   : > { %p2465_p7 = pnand %p2463_p5, %p2907_p8  ;;  %p2472_p11 = por %p2471_p10, %p2470_p4 }
  0xe3   : > { %p2466_p9 = pneg %p2465_p7 }
  0xe5   : > { %p2473_p12 = pnand %p2472_p11, %p2466_p9 }
  0xe7   : > { %2476 = shalt.err (!%p2473_p12)
}
  0xe8   : > { %2107 = dma.hbm_to_vmem [thread:$0]  (!%p2891_p6), %s3526_s6, 256, %s435_s18, [#allocation12], %s3525_s26, %s3525_s26, %s2753_s20  }
  0xe9   : > { %s2477_s1 = scalar_lea.hbm %s3487_s8, 512 }
  0xea   : > { %p2478_p13 = scmp.ne.s32.totalorder %s3487_s8, %s2477_s1  ;;  %p2484_p3 = scmp.lt.u32.totalorder %s2477_s1, %s3487_s8 }
  0xec   : > { %p2480_p0 = pnand %p2478_p13, %p2907_p8 }
  0xee   : > { %p2481_p1 = pneg %p2480_p0 }
  0xf0   : > { %p2486_p2 = pnand %p2484_p3, %p2481_p1 }
  0xf2   : > { %2489 = shalt.err (!%p2486_p2)
}
  0xf3   : > { %s2490_s19 = scalar_lea.vmem %s459_s0, 512  ;;  %p2498_p4 = scmp.lt.s32.totalorder %s459_s0, %s459_s0 }
  0xf4   : > { %p2491_p5 = scmp.ne.s32.totalorder %s459_s0, %s2490_s19  ;;  %p2499_p10 = scmp.lt.s32.totalorder %s2490_s19, %s2490_s19 }
  0xf6   : > { %p2493_p7 = pnand %p2491_p5, %p2907_p8  ;;  %p2500_p11 = por %p2499_p10, %p2498_p4 }
  0xf8   : > { %p2494_p9 = pneg %p2493_p7 }
  0xfa   : > { %p2501_p12 = pnand %p2500_p11, %p2494_p9 }
  0xfc   : > { %2504 = shalt.err (!%p2501_p12)
}
  0xfd   : > { %2113 = dma.hbm_to_vmem [thread:$0]  (!%p2891_p6), %s3487_s8, 512, %s459_s0, [#allocation15], %s3525_s26, %s3525_s26, %s2753_s20  }
  0xfe   : > { %s2760_s2 = smov [#allocation19]   ;;  %s2761_s24 = smov [#allocation22]  }
  0xff   : > { %s483_s28 = sshll.u32 %s2760_s2, 4  ;;  %s505_s22 = sshll.u32 %s2761_s24, 4  ;;  %s484_s28 = int_to_ptr.vmem [resolvable:$true] %s483_s28  ;;  %s506_s22 = int_to_ptr.vmem [resolvable:$true] %s505_s22 }
 0x100   : > { %s2505_s27 = scalar_lea.hbm %s3489_s10, 16 }
 0x101   : > { %p2506_p13 = scmp.ne.s32.totalorder %s3489_s10, %s2505_s27  ;;  %p2512_p3 = scmp.lt.u32.totalorder %s2505_s27, %s3489_s10 }
 0x103   : > { %p2508_p0 = pnand %p2506_p13, %p2907_p8 }
 0x105   : > { %p2509_p1 = pneg %p2508_p0 }
 0x107   : > { %p2514_p2 = pnand %p2512_p3, %p2509_p1 }
 0x109   : > { %2517 = shalt.err (!%p2514_p2)
}
 0x10a   : > { %s2518_s20 = scalar_lea.vmem %s484_s28, 16  ;;  %s2525_s26 = scalar_lea.vmem %s484_s28, 32 }
 0x10b   : > { %p2519_p5 = scmp.ne.s32.totalorder %s484_s28, %s2518_s20  ;;  %p2526_p4 = scmp.lt.s32.totalorder %s484_s28, %s484_s28 }
 0x10c   : > { %p2527_p10 = scmp.lt.s32.totalorder %s2525_s26, %s2518_s20 }
 0x10d   : > { %p2521_p7 = pnand %p2519_p5, %p2907_p8 }
 0x10e   : > { %p2528_p11 = por %p2527_p10, %p2526_p4 }
 0x10f   : > { %p2522_p9 = pneg %p2521_p7 }
 0x111   : > { %p2529_p12 = pnand %p2528_p11, %p2522_p9 }
 0x113   : > { %2532 = shalt.err (!%p2529_p12)
}
 0x114   : > { %2119 = dma.hbm_to_vmem [thread:$0]  (!%p2891_p6), %s3489_s10, 16, %s484_s28, [#allocation18]  }
 0x115   : > { %s2533_s1 = scalar_lea.hbm %s3491_s12, 16 }
 0x116   : > { %p2534_p13 = scmp.ne.s32.totalorder %s3491_s12, %s2533_s1  ;;  %p2540_p3 = scmp.lt.u32.totalorder %s2533_s1, %s3491_s12 }
 0x118   : > { %p2536_p0 = pnand %p2534_p13, %p2907_p8 }
 0x11a   : > { %p2537_p1 = pneg %p2536_p0 }
 0x11c   : > { %p2542_p2 = pnand %p2540_p3, %p2537_p1 }
 0x11e   : > { %2545 = shalt.err (!%p2542_p2)
}
 0x11f   : > { %s2546_s19 = scalar_lea.vmem %s506_s22, 16  ;;  %s2553_s28 = scalar_lea.vmem %s506_s22, 32 }
 0x120   : > { %p2547_p5 = scmp.ne.s32.totalorder %s506_s22, %s2546_s19  ;;  %p2554_p4 = scmp.lt.s32.totalorder %s506_s22, %s506_s22 }
 0x121   : > { %p2555_p10 = scmp.lt.s32.totalorder %s2553_s28, %s2546_s19 }
 0x122   : > { %p2549_p7 = pnand %p2547_p5, %p2907_p8 }
 0x123   : > { %p2556_p11 = por %p2555_p10, %p2554_p4 }
 0x124   : > { %p2550_p9 = pneg %p2549_p7 }
 0x126   : > { %p2557_p12 = pnand %p2556_p11, %p2550_p9 }
 0x128   : > { %2560 = shalt.err (!%p2557_p12)
}
 0x129   : > { %2125 = dma.hbm_to_vmem [thread:$0]  (!%p2891_p6), %s3491_s12, 16, %s506_s22, [#allocation21]  }
 0x12a   : > { %s2762_s26 = smov [#allocation23]   ;;  %s2561_s24 = scalar_lea.hbm %s3492_s13, 16 }
 0x12b   : > { %s516_s0 = sshll.u32 %s2762_s26, 4  ;;  %p2562_p13 = scmp.ne.s32.totalorder %s3492_s13, %s2561_s24  ;;  %s517_s0 = int_to_ptr.vmem [resolvable:$true] %s516_s0 }
 0x12c   : > { %p2568_p3 = scmp.lt.u32.totalorder %s2561_s24, %s3492_s13 }
 0x12d   : > { %p2564_p0 = pnand %p2562_p13, %p2907_p8 }
 0x12f   : > { %p2565_p1 = pneg %p2564_p0 }
 0x131   : > { %p2570_p2 = pnand %p2568_p3, %p2565_p1 }
 0x133   : > { %2573 = shalt.err (!%p2570_p2)
}
 0x134   : > { %s2574_s22 = scalar_lea.vmem %s517_s0, 16  ;;  %s2581_s17 = scalar_lea.vmem %s517_s0, 32 }
 0x135   : > { %p2575_p5 = scmp.ne.s32.totalorder %s517_s0, %s2574_s22  ;;  %p2582_p4 = scmp.lt.s32.totalorder %s517_s0, %s517_s0 }
 0x136   : > { %p2583_p10 = scmp.lt.s32.totalorder %s2581_s17, %s2574_s22 }
 0x137   : > { %p2577_p7 = pnand %p2575_p5, %p2907_p8 }
 0x138   : > { %p2584_p11 = por %p2583_p10, %p2582_p4 }
 0x139   : > { %p2578_p9 = pneg %p2577_p7 }
 0x13b   : > { %p2585_p12 = pnand %p2584_p11, %p2578_p9 }
 0x13d   : > { %2588 = shalt.err (!%p2585_p12)
}
 0x13e   : > { %s3527_s21 = sld [smem:[#allocation36_spill]]  ;;  %s3528_s18 = sld [smem:[#allocation37_spill]] }
 0x13f   : > { %2128 = dma.hbm_to_vmem [thread:$0]  (!%p2891_p6), %s3492_s13, 16, %s517_s0, [#allocation24]  }
 0x140   : > { %s1835_s20 = sadd.s32 4294967294, %s2747_s16   ;;  %s3152_s23 = sadd.s32 1, %s2747_s16  }
 0x141   : > { %s43_s26 = ssub.s32 %s2747_s16, %s3152_s23  ;;  %s46_s14 = sadd.s32 1, %s2743_s15 }
 0x142   : > { %p44_p8 = scmp.eq.s32.totalorder %s43_s26, 0  ;;  %p53_p13 = scmp.ne.s32.totalorder %s2743_s15, %s2739_s30 }
 0x143   : > { %p54_p0 = scmp.eq.s32.totalorder %s2747_s16, 0  ;;  %p367_p7 = scmp.eq.s32.totalorder %s1835_s20, 1 }
 0x144   : > { %p59_p1 = scmp.ne.s32.totalorder %s2739_s30, %s3527_s21  ;;  %p3530_p2 = scmp.eq.s32.totalorder %s3528_s18, 0 }
 0x145   : > { %s3163_s2 = scalar_select %p44_p8, %s2743_s15, %s46_s14  }
 0x146   : > { %p3165_p3 = por %p54_p0, %p53_p13  ;;  %p3171_p6 = por %p3530_p2, %p59_p1 }
 0x147   : > { %p361_p5 = scmp.eq.s32.totalorder %s3528_s18, 1  ;;  %p2152_p9 = scmp.lt.s32.totalorder %s2747_s16, 2 }
 0x148   : > { %s3531_s0 = scalar_select %p3171_p6, 1, 0 }
 0x149   : > { %s3178_s1 = sand.u32 1, %s2743_s15   ;;  %p3180_p4 = por %p361_p5, %p53_p13 }
 0x14a   : > { %p3184_p10 = por %p367_p7, %p59_p1  ;;  %s1850_s29 = sshll.u32 %s3178_s1, 3 }
 0x14b   : > { %s3532_s25 = scalar_select %p3180_p4, 1, 0 }
 0x14c   : > { %s3533_s27 = scalar_select %p3184_p10, 1, 0 }
 0x14d   : > { %s1851_s22 = sshll.u32 %s2747_s16, 7  ;;  %s3534_s28 = sld [smem:[#allocation39_spill]] }
 0x14e   : > { %s531_s18 = scalar_lea.vmem [#allocation2], %s1850_s29  ;;  %p3199_p11 = pnand %p2152_p9, %p3165_p3 }
 0x14f   : > { %s538_s20 = sshll.u32 %s531_s18, 4  ;;  %s528_s3 = scalar_lea.sflag [#allocation3], %s3178_s1  ;;  %s3195_s20 = int_to_ptr.vmem [resolvable:$true] %s538_s20 }
 0x150   : > { %p2591_p8 = pneg %p3199_p11 }
 0x153   : > { %s3193_s21 = scalar_lea.hbm %s3534_s28, %s1851_s22  ;;  %s2594_s24 = scalar_lea.hbm %s3534_s28, 256 }
 0x154   : > { %s2589_s17 = scalar_lea.hbm %s3193_s21, 128  ;;  %p2595_p1 = scmp.lt.u32.totalorder %s3193_s21, %s3534_s28 }
 0x155   : > { %p2590_p12 = scmp.ne.s32.totalorder %s3193_s21, %s2589_s17  ;;  %p2596_p3 = scmp.lt.u32.totalorder %s2594_s24, %s2589_s17 }
 0x156   : > { %p2598_p5 = scmp.lt.u32.totalorder %s2589_s17, %s3193_s21 }
 0x157   : > { %p2592_p13 = pnand %p2591_p8, %p2590_p12  ;;  %p2597_p2 = por %p2596_p3, %p2595_p1 }
 0x159   : > { %p2593_p0 = pneg %p2592_p13  ;;  %p2599_p7 = por %p2598_p5, %p2597_p2 }
 0x15b   : > { %p2600_p9 = pnand %p2599_p7, %p2593_p0 }
 0x15d   : > { %2603 = shalt.err (!%p2600_p9)
}
 0x15e   : > { %s2604_s14 = scalar_lea.vmem %s3195_s20, 128  ;;  %s2763_s29 = smov [#allocation2]  }
 0x15f   : > { %p2605_p12 = scmp.ne.s32.totalorder %s3195_s20, %s2604_s14  ;;  %s2609_s22 = sshll.u32 %s2763_s29, 4  ;;  %s2610_s22 = int_to_ptr.vmem [resolvable:$false] %s2609_s22 }
 0x160   : > { %s2611_s19 = scalar_lea.vmem %s2610_s22, 256  ;;  %p2612_p4 = scmp.lt.s32.totalorder %s3195_s20, %s2610_s22 }
 0x161   : > { %p2607_p13 = pnand %p2605_p12, %p2591_p8  ;;  %p2613_p1 = scmp.lt.s32.totalorder %s2611_s19, %s2604_s14 }
 0x163   : > { %p2608_p10 = pneg %p2607_p13  ;;  %p2614_p3 = por %p2613_p1, %p2612_p4 }
 0x165   : > { %p2615_p2 = pnand %p2614_p3, %p2608_p10 }
 0x167   : > { %2618 = shalt.err (!%p2615_p2)
}
 0x168   : > { %2132 = dma.hbm_to_vmem [thread:$0]  (!%p3199_p11), %s3193_s21, 128, %s3195_s20, %s528_s3  }
 0x169   : > { %s1852_s17 = sshll.u32 %s2747_s16, 4  ;;  %s548_s24 = scalar_lea.vmem [#allocation5], %s3178_s1 }
 0x16a   : > { %s555_s18 = sshll.u32 %s548_s24, 4  ;;  %s3536_s5 = sld [smem:[#allocation40_spill]]  ;;  %s556_s18 = int_to_ptr.vmem [resolvable:$true] %s555_s18 }
 0x16b   : > { %s3537_s14 = sand.u32 1, %s2747_s16  }
 0x16c   : > { %s546_s19 = scalar_lea.sflag [#allocation6], %s3537_s14 }
 0x170   : > { %s3235_s22 = scalar_lea.hbm %s3536_s5, %s1852_s17  ;;  %s2624_s21 = scalar_lea.hbm %s3536_s5, 32 }
 0x171   : > { %s2619_s6 = scalar_lea.hbm %s3235_s22, 16  ;;  %p2625_p5 = scmp.lt.u32.totalorder %s3235_s22, %s3536_s5 }
 0x172   : > { %p2620_p4 = scmp.ne.s32.totalorder %s3235_s22, %s2619_s6  ;;  %p2626_p7 = scmp.lt.u32.totalorder %s2624_s21, %s2619_s6 }
 0x173   : > { %p2628_p12 = scmp.lt.u32.totalorder %s2619_s6, %s3235_s22 }
 0x174   : > { %p2622_p10 = pnand %p2620_p4, %p2591_p8  ;;  %p2627_p9 = por %p2626_p7, %p2625_p5 }
 0x176   : > { %p2623_p0 = pneg %p2622_p10  ;;  %p2629_p13 = por %p2628_p12, %p2627_p9 }
 0x178   : > { %p2630_p1 = pnand %p2629_p13, %p2623_p0 }
 0x17a   : > { %2633 = shalt.err (!%p2630_p1)
}
 0x17b   : > { %s2634_s17 = scalar_lea.vmem %s556_s18, 16  ;;  %s2764_s24 = smov [#allocation5]  }
 0x17c   : > { %p2635_p3 = scmp.ne.s32.totalorder %s556_s18, %s2634_s17  ;;  %s2639_s29 = sshll.u32 %s2764_s24, 4  ;;  %s2640_s29 = int_to_ptr.vmem [resolvable:$false] %s2639_s29 }
 0x17d   : > { %s2641_s14 = scalar_lea.vmem %s2640_s29, 32  ;;  %p2642_p10 = scmp.lt.s32.totalorder %s556_s18, %s2640_s29 }
 0x17e   : > { %p2637_p2 = pnand %p2635_p3, %p2591_p8  ;;  %p2643_p6 = scmp.lt.s32.totalorder %s2641_s14, %s2634_s17 }
 0x180   : > { %p2638_p4 = pneg %p2637_p2  ;;  %p2644_p5 = por %p2643_p6, %p2642_p10 }
 0x182   : > { %p2645_p7 = pnand %p2644_p5, %p2638_p4 }
 0x184   : > { %2648 = shalt.err (!%p2645_p7)
}
 0x185   : > { %2135 = dma.hbm_to_vmem [thread:$0]  (!%p3199_p11), %s3235_s22, 16, %s556_s18, %s546_s19  }
 0x186   : > { %s3538_s6 = sld [smem:[#allocation38_spill]] }
 0x18c   : > { %p3539_p0 = scmp.ne.s32.totalorder %s3538_s6, 0 }
 0x18d   : > { %s3261_s3 = sand.u32 (!%p3539_p0), 1, %s2739_s30   ;;  %p3540_p6 = scmp.ne.s32.totalorder (!%p3539_p0), %s3531_s0, 0 }
 0x18e   : > { %564 = sbr.rel (%p3539_p0) target bundleno = 4122 (0x101a), region = 76  ;;  %s1854_s1 = sshll.u32 (!%p3539_p0), %s3261_s3, 3 }
 0x18f   : > { %s567_s21 = scalar_lea.sflag (!%p3539_p0), [#allocation3], %s3261_s3  ;;  %s3267_s4 = scalar_lea.vmem (!%p3539_p0), [#allocation2], %s1854_s1 }
 0x195   : > { %2694 = dma.done.wait (%p3540_p6), %s567_s21, 128  }
 0x196   : > { %2696 = vsyncadd (%p3540_p6), %s567_s21, 4294967168  ;;  %s3541_s26 = sld [smem:[#allocation37_spill]]  ;;  %s578_s19 = scalar_lea.vmem [#allocation5], %s3261_s3 }
 0x19c   : > { %s575_s18 = sand.u32 1, %s3541_s26  }
 0x19d   : > { %s576_s22 = scalar_lea.sflag [#allocation6], %s575_s18 }
 0x19e   : > { %2698 = dma.done.wait (%p3540_p6), %s576_s22, 16  }
 0x19f   : > { %2700 = vsyncadd (%p3540_p6), %s576_s22, 4294967280  ;;  %p3542_p11 = scmp.eq.s32.totalorder %s3541_s26, 0 }
 0x1a1   : > { %2702 = dma.done.wait (%p3542_p11), [#allocation6], 256   ;;  %p3543_p8 = pmov %p3542_p11 }
 0x1a3   : > { %2704 = vsyncadd (%p3543_p8), [#allocation6], 4294967040  ;;  %p3544_p9 = pmov %p3543_p8 }
 0x1a4   : > { %p3545_p12 = pmov %p3543_p8 }
 0x1a5   : > { %2706 = dma.done.wait (%p3544_p9), [#allocation9], 272  }
 0x1a6   : > { %2708 = vsyncadd (%p3545_p12), [#allocation9], 4294967024  ;;  %p3546_p13 = pmov %p3543_p8 }
 0x1a7   : > { %p3547_p1 = pmov %p3543_p8 }
 0x1a8   : > { %2710 = dma.done.wait (%p3546_p13), [#allocation12], 272  }
 0x1a9   : > { %2712 = vsyncadd (%p3547_p1), [#allocation12], 4294967024  ;;  %p3548_p3 = pmov %p3547_p1 }
 0x1aa   : > { %p3549_p2 = pmov %p3547_p1 }
 0x1ab   : > { %2714 = dma.done.wait (%p3548_p3), [#allocation15], 528  }
 0x1ac   : > { %2716 = vsyncadd (%p3549_p2), [#allocation15], 4294966768  ;;  %p3550_p4 = pmov %p3547_p1 }
 0x1ad   : > { %p3551_p10 = pmov %p3547_p1 }
 0x1ae   : > { %2718 = dma.done.wait (%p3550_p4), [#allocation18], 32  }
 0x1af   : > { %2720 = vsyncadd (%p3551_p10), [#allocation18], 4294967264  ;;  %p3552_p5 = pmov %p3547_p1 }
 0x1b0   : > { %p3553_p7 = pmov %p3547_p1 }
 0x1b1   : > { %2722 = dma.done.wait (%p3552_p5), [#allocation21], 32  }
 0x1b2   : > { %2724 = vsyncadd (%p3553_p7), [#allocation21], 4294967264  ;;  %p3554_p0 = pmov %p3547_p1 }
 0x1b4   : > { %2726 = dma.done.wait (%p3554_p0), [#allocation24], 16   ;;  %p3555_p6 = pmov %p3554_p0 }
 0x1b5   : > { %v2765_v0 = vmov 0.0   ;;  %vm2766_vm0 = vmmov 0   ;;  %v2225_v1 = vld [vmem:[#allocation7] sm:$0xff]   ;;  %v2226_v2 = vld [vmem:[#allocation7 + $0x8] sm:$0xff]   ;;  %vm703_vm1 = vcmask 261120   ;;  %s2767_s0 = smov 96   ;;  %v752_v19 = vlaneseq }
 0x1b6   : > { %2728 = vsyncadd (%p3555_p6), [#allocation24], 4294967280  ;;  %1938 = vmatprep.subr.bf16.mxu1 %v2765_v0  ;;  %1942 = vmatprep.mubr.msk.bf16.mxu1 %vm2766_vm0, %v2765_v0  ;;  %v3314_v3 = vld [vmem:[%s3267_s4] sm:$0xff]  ;;  %s2768_s20 = smov 120   ;;  %s2769_s17 = smov 88   ;;  %vm760_vm2 = vcmask 64512  }
 0x1b7   : > { %1952 = vmatprep.subr.bf16.mxu0 %v2765_v0  ;;  %1954 = vmatprep.mubr.msk.bf16.mxu0 %vm2766_vm0, %v2765_v0  ;;  %v679_v4 = vpack.c.bf16 %v3314_v3, %v3314_v3  ;;  %v1868_v5 = vld [vmem:[#allocation8] ss:$0 sm:$0xff]  ;;  %v753_v20 = vshrl.u32 %v752_v19, 7  ;;  %v677_v21 = vld [vmem:[%s578_s19] sm:$0x1]  ;;  %s2770_s24 = smov 64  }
 0x1b8   : > { %1939 = vmatpush3.bf16.msra.mxu1 %v2225_v1  ;;  %v678_v22 = vmul.f32 -1e+09, %v677_v21  ;;  %s2771_s29 = smov 56   ;;  %s2772_s14 = smov 112   ;;  %vm824_vm3 = vcmask 1043456   ;;  %vm1542_vm4 = vcmask 523264  }
 0x1b9   : > { %1940 = vmatprep.subr.bf16.mxu1 %v2765_v0  ;;  %v754_v23 = vsub.s32 0, %v753_v20  ;;  %s2773_s6 = smov 80   ;;  %v869_v59 = vld [vmem:[#allocation10] sm:$0xf]  ;;  %v983_v61 = vld [vmem:[#allocation10 + $0x4] sm:$0xf] }
 0x1ba   : > { %v1034_v60 = vsel %vm824_vm3, %v869_v59, 0  ;;  %v988_v62 = vsel %vm824_vm3, %v983_v61, 0  ;;  %s2774_s21 = smov 72   ;;  %s2775_s4 = smov 104  }
 0x1bb   : > { %v3343_v24 = vrot.slane %v678_v22, %v754_v23  ;;  %s2776_s18 = smov 48   ;;  %s2777_s22 = smov 40  }
 0x1bc   : > { %1941 = vmatpush3.bf16.msra.mxu1 %v2226_v2  ;;  %s1900_s19 = sshll.u32 %s3541_s26, 7  ;;  %p3558_p8 = scmp.ne.s32.totalorder %s3532_s25, 0 }
 0x1bd   : > { %1946 = vmatprep.subr.bf16.mxu1 %v2765_v0 }
 0x1bf   : > { %1943 = vmatmul.mubr.msk.bf16.vlgmr.msra.gmra.mrb[0].mxu1 %vm703_vm1, %v679_v4 }
 0x1c0   : > { %1948 = vmatprep.mubr.msk.bf16.mxu1 %vm2766_vm0, %v2765_v0 }
 0x292   : > { %v741_v6 = vpop.f32.mrb[0].mxu1 }
 0x293   : > { %v742_v7 = vadd.f32 %v1868_v5, %v741_v6  ;;  %v1944_v8 = vpop.f32.mrb[1].mxu1 }
 0x294   : > { %v744_v9 = vpop.f32.mrb[2].mxu1 }
 0x295   : > { %v748_v10 = vmul.f32 0.35355338, %v742_v7  ;;  %v3323_v11 = vpack.c.bf16 %v742_v7, %v742_v7  ;;  %v1945_v12 = vpop.f32.mrb[3].mxu1 }
 0x297   : > { %v3325_v13 = vpack.c.bf16 %v748_v10, %v748_v10  ;;  %758 = vrot.lane.b32.xlu0 %v3323_v11, %s2767_s0  ;;  %s674_s0 = scalar_lea.vmem [#allocation25], %s1854_s1  ;;  %s2778_s1 = smov [#allocation25]  }
 0x298   : > { %s2653_s26 = sshll.u32 %s2778_s1, 4  ;;  %s2654_s26 = int_to_ptr.vmem [resolvable:$false] %s2653_s26 }
 0x299   : > { %871 = vrot.lane.b32.xlu1 %v3325_v13, %s2768_s20  ;;  %s1631_s20 = sshll.u32 %s674_s0, 4  ;;  %s3436_s20 = int_to_ptr.vmem [resolvable:$true] %s1631_s20 }
 0x29a   : > { %p2656_p13 = scmp.lt.s32.totalorder %s3436_s20, %s2654_s26 }
 0x29b   : > { %873 = vrot.lane.b32.xlu0 %v3323_v11, %s2769_s17 }
 0x309   : > { %v759_v14 = vpop.permute.xlu0 %758 }
 0x30a   : > { %v765_v15 = vsel %vm760_vm2, %v759_v14, 0 }
 0x30b   : > { %1947 = vmatpush3.bf16.xpose.msra.mxu1 %v765_v15  ;;  %v872_v18 = vpop.permute.xlu1 %871 }
 0x30c   : > { %1958 = vmatprep.subr.bf16.mxu1 %v2765_v0 }
 0x30d   : > { %v874_v16 = vpop.permute.xlu0 %873 }
 0x30e   : > { %v879_v17 = vsel %vm760_vm2, %v874_v16, 0 }
 0x312   : > { %1949 = vmatmul.mubr.msk.bf16.vlgmr.msra.gmra.mrb[4].mxu1 %vm760_vm2, %v3325_v13 }
 0x313   : > { %1959 = vmatpush3.bf16.xpose.msra.mxu1 %v879_v17  ;;  %1960 = vmatprep.mubr.msk.bf16.mxu1 %vm2766_vm0, %v2765_v0 }
 0x314   : > { %1970 = vmatprep.subr.bf16.mxu1 %v2765_v0 }
 0x31a   : > { %1961 = vmatmul.mubr.msk.bf16.vlgmr.msra.gmra.mrb[8].mxu1 %vm760_vm2, %v872_v18 }
 0x31b   : > { %1972 = vmatprep.mubr.msk.bf16.mxu1 %vm2766_vm0, %v2765_v0  ;;  %1971 = vmatpush3.bf16.msra.mxu1 %v988_v62 }
 0x31c   : > { %1982 = vmatprep.subr.bf16.mxu1 %v2765_v0 }
 0x3e5   : > { %v801_v25 = vpop.f32.mrb[4].mxu1 }
 0x3e6   : > { %v802_v26 = vadd.f32 %v801_v25, %v3343_v24  ;;  %v1950_v27 = vpop.f32.mrb[5].mxu1 }
 0x3e7   : > { %v804_v28 = vpop.f32.mrb[6].mxu1 }
 0x3e8   : > { %v1951_v29 = vpop.f32.mrb[7].mxu1  ;;  %v807_v30 = vsel %vm760_vm2, %v802_v26, -inf }
 0x3e9   : > { %808 = vmax.xlane.f32.xlu1 %v807_v30 }
 0x3ed   : > { %v915_v31 = vpop.f32.mrb[8].mxu1 }
 0x3ee   : > { %v916_v32 = vadd.f32 %v915_v31, %v3343_v24  ;;  %v1962_v33 = vpop.f32.mrb[9].mxu1 }
 0x3ef   : > { %v918_v34 = vpop.f32.mrb[10].mxu1 }
 0x3f0   : > { %v1963_v35 = vpop.f32.mrb[11].mxu1  ;;  %v921_v36 = vsel %vm760_vm2, %v916_v32, -inf }
 0x3f1   : > { %922 = vmax.xlane.f32.xlu0 %v921_v36 }
 0x476   : > { %v809_v37 = vpop.xlane.xlu1 %808 }
 0x477   : > { %v810_v38 = vsub.f32 %v802_v26, %v809_v37 }
 0x479   : > { %v811_v39 = vmul.f32 1.442695, %v810_v38 }
 0x47b   : > { %2233 = vpow2.f32 %v811_v39 }
 0x47e   : > { %v923_v40 = vpop.xlane.xlu0 %922 }
 0x47f   : > { %v924_v41 = vsub.f32 %v916_v32, %v923_v40 }
 0x481   : > { %v925_v42 = vmul.f32 1.442695, %v924_v41 }
 0x483   : > { %2235 = vpow2.f32 %v925_v42 }
 0x485   : > { %v2234_v43 = vpop.eup %2233 }
 0x486   : > { %v813_v44 = vsel %vm760_vm2, %v2234_v43, 0.0 }
 0x487   : > { %814 = vadd.xlane.f32.xlu0 %v813_v44 }
 0x48d   : > { %v2236_v45 = vpop.eup %2235 }
 0x48e   : > { %v927_v46 = vsel %vm760_vm2, %v2236_v45, 0.0 }
 0x48f   : > { %928 = vadd.xlane.f32.xlu1 %v927_v46 }
 0x49d   : > { %819 = vrot.lane.b32.xlu0 %v3323_v11, %s2770_s24 }
 0x4a0   : > { %933 = vrot.lane.b32.xlu1 %v3323_v11, %s2771_s29  ;;  %s3556_s29 = sld [smem:[#allocation46_spill]] }
 0x4a1   : > { %1076 = vrot.lane.b32.xlu0 %v3325_v13, %s2772_s14 }
 0x4a4   : > { %1078 = vrot.lane.b32.xlu1 %v3323_v11, %s2773_s6 }
 0x4a6   : > { %s3557_s14 = smov %s3556_s29  ;;  %s3434_s6 = scalar_lea.hbm %s3556_s29, %s1900_s19 }
 0x514   : > { %v815_v47 = vpop.xlane.xlu0 %814 }
 0x515   : > { %2237 = vrcp.f32 %v815_v47 }
 0x518   : > { %v820_v48 = vpop.permute.xlu0 %819 }
 0x519   : > { %v826_v49 = vsel %vm824_vm3, %v820_v48, 0 }
 0x51a   : > { %1953 = vmatpush3.bf16.msra.mxu0 %v826_v49 }
 0x51b   : > { %1964 = vmatprep.subr.bf16.mxu0 %v2765_v0 }
 0x51c   : > { %v929_v50 = vpop.xlane.xlu1 %928  ;;  %v1077_v15 = vpop.permute.xlu0 %1076 }
 0x51d   : > { %2239 = vrcp.f32 %v929_v50 }
 0x51f   : > { %v2238_v51 = vpop.eup %2237 }
 0x520   : > { %v817_v52 = vmul.f32 %v2238_v51, %v2234_v43  ;;  %v934_v53 = vpop.permute.xlu1 %933 }
 0x521   : > { %v939_v55 = vsel %vm824_vm3, %v934_v53, 0 }
 0x522   : > { %v818_v54 = vpack.c.bf16 %v817_v52, %v817_v52 }
 0x524   : > { %1955 = vmatmul.mubr.msk.bf16.vlgmr.msra.gmra.mrb[0].mxu0 %vm760_vm2, %v818_v54  ;;  %v1079_v6 = vpop.permute.xlu1 %1078 }
 0x525   : > { %1965 = vmatpush3.bf16.msra.mxu0 %v939_v55  ;;  %1966 = vmatprep.mubr.msk.bf16.mxu0 %vm2766_vm0, %v2765_v0  ;;  %v1084_v12 = vsel %vm760_vm2, %v1079_v6, 0 }
 0x526   : > { %1976 = vmatprep.subr.bf16.mxu0 %v2765_v0 }
 0x527   : > { %v2240_v56 = vpop.eup %2239 }
 0x528   : > { %v931_v57 = vmul.f32 %v2240_v56, %v2236_v45  ;;  %v1188_v45 = vld [vmem:[#allocation10 + $0x8] sm:$0xf] }
 0x529   : > { %v1193_v46 = vsel %vm824_vm3, %v1188_v45, 0 }
 0x52a   : > { %v932_v58 = vpack.c.bf16 %v931_v57, %v931_v57 }
 0x52c   : > { %1967 = vmatmul.mubr.msk.bf16.vlgmr.msra.gmra.mrb[4].mxu0 %vm760_vm2, %v932_v58 }
 0x52d   : > { %1978 = vmatprep.mubr.msk.bf16.mxu0 %vm2766_vm0, %v2765_v0  ;;  %1977 = vmatpush3.bf16.msra.mxu0 %v1034_v60 }
 0x52e   : > { %1988 = vmatprep.subr.bf16.mxu0 %v2765_v0 }
 0x5f7   : > { %v862_v63 = vpop.f32.mrb[0].mxu0 }
 0x5f8   : > { %v868_v1 = vpack.c.bf16 %v862_v63, %v862_v63  ;;  %v1956_v2 = vpop.f32.mrb[1].mxu0 }
 0x5f9   : > { %v865_v4 = vpop.f32.mrb[2].mxu0 }
 0x5fa   : > { %v1957_v5 = vpop.f32.mrb[3].mxu0  ;;  %1979 = vmatmul.mubr.msk.bf16.vlgmr.msra.gmra.mrb[8].mxu0 %vm760_vm2, %v868_v1  ;;  %v1348_v1 = vld [vmem:[#allocation10 + $0xc] sm:$0xf] }
 0x5fb   : > { %1990 = vmatprep.mubr.msk.bf16.mxu0 %vm2766_vm0, %v2765_v0  ;;  %v1353_v2 = vsel %vm824_vm3, %v1348_v1, 0 }
 0x5ff   : > { %v975_v7 = vpop.f32.mrb[4].mxu0 }
 0x600   : > { %v981_v8 = vpack.c.bf16 %v975_v7, %v975_v7  ;;  %v1968_v9 = vpop.f32.mrb[5].mxu0 }
 0x601   : > { %v978_v10 = vpop.f32.mrb[6].mxu0 }
 0x602   : > { %v1969_v14 = vpop.f32.mrb[7].mxu0  ;;  %1973 = vmatmul.mubr.msk.bf16.vlgmr.msra.gmra.mrb[12].mxu1 %vm760_vm2, %v981_v8 }
 0x603   : > { %1983 = vmatpush3.bf16.xpose.msra.mxu1 %v1084_v12  ;;  %1984 = vmatprep.mubr.msk.bf16.mxu1 %vm2766_vm0, %v2765_v0 }
 0x604   : > { %1994 = vmatprep.subr.bf16.mxu1 %v2765_v0 }
 0x60a   : > { %1985 = vmatmul.mubr.msk.bf16.vlgmr.msra.gmra.mrb[16].mxu1 %vm760_vm2, %v1077_v15 }
 0x60b   : > { %1996 = vmatprep.mubr.msk.bf16.mxu1 %vm2766_vm0, %v2765_v0  ;;  %1995 = vmatpush3.bf16.msra.mxu1 %v1193_v46  ;;  %v2231_v46 = vld [vmem:[#allocation16 + $0x10] sm:$0xff]  }
 0x60c   : > { %2006 = vmatprep.subr.bf16.mxu1 %v2765_v0 }
 0x6cd   : > { %v1070_v16 = vpop.f32.mrb[8].mxu0 }
 0x6ce   : > { %v1980_v17 = vpop.f32.mrb[9].mxu0 }
 0x6cf   : > { %v1073_v18 = vpop.f32.mrb[10].mxu0 }
 0x6d0   : > { %v1981_v19 = vpop.f32.mrb[11].mxu0 }
 0x6d1   : > { %v1884_v19 = vld [vmem:[#allocation11] ss:$0 sm:$0xff] }
 0x6d5   : > { %v1024_v20 = vpop.f32.mrb[12].mxu1 }
 0x6d6   : > { %v3380_v21 = vadd.f32 %v1070_v16, %v1024_v20  ;;  %v1974_v22 = vpop.f32.mrb[13].mxu1 }
 0x6d7   : > { %v1027_v23 = vpop.f32.mrb[14].mxu1 }
 0x6d8   : > { %v1975_v25 = vpop.f32.mrb[15].mxu1 }
 0x6dd   : > { %v1120_v26 = vpop.f32.mrb[16].mxu1 }
 0x6de   : > { %v1121_v27 = vadd.f32 %v1120_v26, %v3343_v24  ;;  %v1986_v28 = vpop.f32.mrb[17].mxu1 }
 0x6df   : > { %v1123_v29 = vpop.f32.mrb[18].mxu1 }
 0x6e0   : > { %v1987_v30 = vpop.f32.mrb[19].mxu1  ;;  %v1126_v31 = vsel %vm760_vm2, %v1121_v27, -inf }
 0x6e1   : > { %1127 = vmax.xlane.f32.xlu1 %v1126_v31 }
 0x6f2   : > { %1238 = vrot.lane.b32.xlu1 %v3323_v11, %s2774_s21  ;;  %s1618_s21 = scalar_lea.sflag [#allocation4], %s3261_s3 }
 0x6f6   : > { %1236 = vrot.lane.b32.xlu1 %v3325_v13, %s2775_s4  ;;  %s2649_s4 = scalar_lea.vmem %s3436_s20, 128 }
 0x6f7   : > { %p2650_p11 = scmp.ne.s32.totalorder %s3436_s20, %s2649_s4 }
 0x6f9   : > { %p2651_p9 = pnand %p2650_p11, %p3558_p8 }
 0x6fb   : > { %p2652_p12 = pneg %p2651_p9 }
 0x76e   : > { %v1128_v32 = vpop.xlane.xlu1 %1127 }
 0x76f   : > { %v1129_v33 = vsub.f32 %v1121_v27, %v1128_v32 }
 0x771   : > { %v1130_v34 = vmul.f32 1.442695, %v1129_v33 }
 0x772   : > { %v1239_v41 = vpop.permute.xlu1 %1238 }
 0x773   : > { %2241 = vpow2.f32 %v1130_v34  ;;  %v1244_v43 = vsel %vm760_vm2, %v1239_v41, 0  ;;  %v2227_v34 = vld [vmem:[#allocation13] sm:$0xff]  }
 0x776   : > { %v1237_v44 = vpop.permute.xlu1 %1236 }
 0x77d   : > { %v2242_v35 = vpop.eup %2241 }
 0x77e   : > { %v1132_v36 = vsel %vm760_vm2, %v2242_v35, 0.0 }
 0x77f   : > { %1133 = vadd.xlane.f32.xlu0 %v1132_v36  ;;  %v2229_v36 = vld [vmem:[#allocation16] sm:$0xff]  }
 0x795   : > { %1138 = vrot.lane.b32.xlu0 %v3323_v11, %s2776_s18  ;;  %s2655_s18 = scalar_lea.vmem %s2654_s26, 256 }
 0x796   : > { %p2657_p1 = scmp.lt.s32.totalorder %s2655_s18, %s2649_s4 }
 0x798   : > { %p2658_p3 = por %p2657_p1, %p2656_p13 }
 0x79a   : > { %p2659_p2 = pnand %p2658_p3, %p2652_p12 }
 0x80c   : > { %v1134_v37 = vpop.xlane.xlu0 %1133 }
 0x80d   : > { %2243 = vrcp.f32 %v1134_v37  ;;  %v2230_v37 = vld [vmem:[#allocation16 + $0x8] sm:$0xff]  }
 0x810   : > { %v1139_v38 = vpop.permute.xlu0 %1138 }
 0x811   : > { %v1144_v39 = vsel %vm824_vm3, %v1139_v38, 0 }
 0x812   : > { %1989 = vmatpush3.bf16.msra.mxu0 %v1144_v39 }
 0x813   : > { %2000 = vmatprep.subr.bf16.mxu0 %v2765_v0 }
 0x817   : > { %v2244_v13 = vpop.eup %2243 }
 0x818   : > { %v1136_v40 = vmul.f32 %v2244_v13, %v2242_v35  ;;  %v2228_v35 = vld [vmem:[#allocation13 + $0x8] sm:$0xff]  }
 0x81a   : > { %v1137_v42 = vpack.c.bf16 %v1136_v40, %v1136_v40  ;;  %v1885_v40 = vld [vmem:[#allocation19] ss:$0 sm:$0xff] }
 0x81c   : > { %1991 = vmatmul.mubr.msk.bf16.vlgmr.msra.gmra.mrb[12].mxu0 %vm760_vm2, %v1137_v42  ;;  %v1886_v42 = vld [vmem:[#allocation20] ss:$0 sm:$0xff] }
 0x81d   : > { %2001 = vmatpush3.bf16.xpose.msra.mxu0 %v1244_v43  ;;  %2002 = vmatprep.mubr.msk.bf16.mxu0 %vm2766_vm0, %v2765_v0 }
 0x81e   : > { %2012 = vmatprep.subr.bf16.mxu0 %v2765_v0 }
 0x824   : > { %2003 = vmatmul.mubr.msk.bf16.vlgmr.msra.gmra.mrb[16].mxu0 %vm760_vm2, %v1237_v44 }
 0x825   : > { %2014 = vmatprep.mubr.msk.bf16.mxu0 %vm2766_vm0, %v2765_v0  ;;  %2013 = vmatpush3.bf16.msra.mxu0 %v1353_v2 }
 0x826   : > { %2026 = vmatprep.subr.bf16.mxu0 %v2765_v0 }
 0x8ef   : > { %v1180_v47 = vpop.f32.mrb[12].mxu0 }
 0x8f0   : > { %v1186_v48 = vpack.c.bf16 %v1180_v47, %v1180_v47  ;;  %v1992_v49 = vpop.f32.mrb[13].mxu0  ;;  %v2232_v47 = vld [vmem:[#allocation16 + $0x18] sm:$0xff]  }
 0x8f1   : > { %v1183_v50 = vpop.f32.mrb[14].mxu0 }
 0x8f2   : > { %v1993_v51 = vpop.f32.mrb[15].mxu0  ;;  %1997 = vmatmul.mubr.msk.bf16.vlgmr.msra.gmra.mrb[20].mxu1 %vm760_vm2, %v1186_v48  ;;  %v1887_v48 = vld [vmem:[#allocation14] ss:$0 sm:$0xff] }
 0x8f3   : > { %2008 = vmatprep.mubr.msk.bf16.mxu1 %vm2766_vm0, %v2765_v0 }
 0x8f7   : > { %v1280_v52 = vpop.f32.mrb[16].mxu0 }
 0x8f8   : > { %v1281_v53 = vadd.f32 %v1280_v52, %v3343_v24  ;;  %v2004_v54 = vpop.f32.mrb[17].mxu0 }
 0x8f9   : > { %v1283_v55 = vpop.f32.mrb[18].mxu0 }
 0x8fa   : > { %v2005_v56 = vpop.f32.mrb[19].mxu0  ;;  %v1286_v57 = vsel %vm760_vm2, %v1281_v53, -inf }
 0x8fb   : > { %1287 = vmax.xlane.f32.xlu0 %v1286_v57  ;;  %v1891_v56 = vld [vmem:[#allocation17] ss:$0 sm:$0xff] }
 0x911   : > { %1298 = vrot.lane.b32.xlu0 %v3323_v11, %s2777_s22 }
 0x988   : > { %v1288_v58 = vpop.xlane.xlu0 %1287 }
 0x989   : > { %v1289_v59 = vsub.f32 %v1281_v53, %v1288_v58 }
 0x98b   : > { %v1290_v60 = vmul.f32 1.442695, %v1289_v59 }
 0x98c   : > { %v1299_v61 = vpop.permute.xlu0 %1298 }
 0x98d   : > { %2245 = vpow2.f32 %v1290_v60  ;;  %v1304_v62 = vsel %vm824_vm3, %v1299_v61, 0 }
 0x98e   : > { %2007 = vmatpush3.bf16.msra.mxu1 %v1304_v62 }
 0x98f   : > { %2018 = vmatprep.subr.bf16.mxu1 %v2765_v0 }
 0x997   : > { %v2246_v24 = vpop.eup %2245 }
 0x998   : > { %v1292_v63 = vsel %vm760_vm2, %v2246_v24, 0.0 }
 0x999   : > { %1293 = vadd.xlane.f32.xlu1 %v1292_v63 }
 0x9c5   : > { %v1229_v11 = vpop.f32.mrb[20].mxu1 }
 0x9c6   : > { %v1235_v4 = vadd.f32 %v1229_v11, %v3380_v21  ;;  %v1998_v5 = vpop.f32.mrb[21].mxu1 }
 0x9c7   : > { %v1232_v6 = vpop.f32.mrb[22].mxu1 }
 0x9c8   : > { %v1999_v7 = vpop.f32.mrb[23].mxu1 }
 0xa26   : > { %v1294_v8 = vpop.xlane.xlu1 %1293 }
 0xa27   : > { %2247 = vrcp.f32 %v1294_v8  ;;  %v1897_v8 = vld [vmem:[#allocation22] ss:$0 sm:$0xff] }
 0xa31   : > { %v2248_v9 = vpop.eup %2247 }
 0xa32   : > { %v1296_v10 = vmul.f32 %v2248_v9, %v2246_v24 }
 0xa34   : > { %v1297_v12 = vpack.c.bf16 %v1296_v10, %v1296_v10  ;;  %v1898_v10 = vld [vmem:[#allocation23] ss:$0 sm:$0xff] }
 0xa36   : > { %2009 = vmatmul.mubr.msk.bf16.vlgmr.msra.gmra.mrb[24].mxu1 %vm760_vm2, %v1297_v12 }
 0xa37   : > { %2022 = vmatprep.mubr.msk.bf16.mxu1 %vm2766_vm0, %v2765_v0  ;;  %2019 = vmatpush3.bf16.msra.mxu1 %v2227_v34 }
 0xa38   : > { %2020 = vmatprep.subr.bf16.mxu1 %v2765_v0 }
 0xa3b   : > { %2021 = vmatpush3.bf16.msra.mxu1 %v2228_v35 }
 0xb09   : > { %v1340_v14 = vpop.f32.mrb[24].mxu1 }
 0xb0a   : > { %v1346_v15 = vpack.c.bf16 %v1340_v14, %v1340_v14  ;;  %v2010_v16 = vpop.f32.mrb[25].mxu1 }
 0xb0b   : > { %v1343_v17 = vpop.f32.mrb[26].mxu1 }
 0xb0c   : > { %v2011_v18 = vpop.f32.mrb[27].mxu1  ;;  %2015 = vmatmul.mubr.msk.bf16.vlgmr.msra.gmra.mrb[20].mxu0 %vm760_vm2, %v1346_v15 }
 0xb0d   : > { %2034 = vmatprep.mubr.msk.bf16.mxu0 %vm2766_vm0, %v2765_v0  ;;  %2027 = vmatpush3.bf16.msra.mxu0 %v2229_v36 }
 0xb0e   : > { %2028 = vmatprep.subr.bf16.mxu0 %v2765_v0 }
 0xb11   : > { %2029 = vmatpush3.bf16.msra.mxu0 %v2230_v37 }
 0xb12   : > { %2030 = vmatprep.subr.bf16.mxu0 %v2765_v0 }
 0xb15   : > { %2031 = vmatpush3.bf16.msra.mxu0 %v2231_v46 }
 0xb16   : > { %2032 = vmatprep.subr.bf16.mxu0 %v2765_v0 }
 0xb19   : > { %2033 = vmatpush3.bf16.msra.mxu0 %v2232_v47 }
 0xbdf   : > { %v1389_v20 = vpop.f32.mrb[20].mxu0 }
 0xbe0   : > { %v1395_v21 = vadd.f32 %v1389_v20, %v1235_v4  ;;  %v2016_v22 = vpop.f32.mrb[21].mxu0 }
 0xbe1   : > { %v1392_v23 = vpop.f32.mrb[22].mxu0 }
 0xbe2   : > { %v1402_v25 = vadd.f32 %v1884_v19, %v1395_v21  ;;  %v2017_v26 = vpop.f32.mrb[23].mxu0 }
 0xbe4   : > { %v1403_v27 = vadd.f32 %v1402_v25, %v3314_v3 }
 0xbe6   : > { %v1406_v28 = vsel %vm703_vm1, %v1403_v27, 0.0 }
 0xbe7   : > { %1407 = vadd.xlane.f32.xlu1 %v1406_v28 }
 0xc74   : > { %v1408_v29 = vpop.xlane.xlu1 %1407 }
 0xc75   : > { %v1410_v30 = vmul.f32 0.03125, %v1408_v29 }
 0xc77   : > { %v1411_v31 = vsub.f32 %v1403_v27, %v1410_v30 }
 0xc79   : > { %v1412_v32 = vmul.f32 %v1411_v31, %v1411_v31 }
 0xc7b   : > { %v1413_v33 = vsel %vm703_vm1, %v1412_v32, 0.0 }
 0xc7c   : > { %1414 = vadd.xlane.f32.xlu1 %v1413_v33 }
 0xd09   : > { %v1415_v3 = vpop.xlane.xlu1 %1414 }
 0xd0a   : > { %v1416_v38 = vmul.f32 0.03125, %v1415_v3 }
 0xd0c   : > { %v1417_v39 = vadd.f32 1e-06, %v1416_v38 }
 0xd0e   : > { %2249 = vrsqrt.f32 %v1417_v39 }
 0xd18   : > { %v2250_v13 = vpop.eup %2249 }
 0xd19   : > { %v1419_v41 = vmul.f32 %v2250_v13, %v1411_v31 }
 0xd1b   : > { %v1426_v43 = vmul.f32 %v1885_v40, %v1419_v41 }
 0xd1d   : > { %v1433_v44 = vadd.f32 %v1886_v42, %v1426_v43 }
 0xd1f   : > { %v1434_v45 = vpack.c.bf16 %v1433_v44, %v1433_v44 }
 0xd21   : > { %2023 = vmatmul.mubr.msk.bf16.vlgmr.msra.gmra.mrb[28].mxu1 %vm703_vm1, %v1434_v45 }
 0xdf4   : > { %v1495_v49 = vpop.f32.mrb[28].mxu1 }
 0xdf5   : > { %v1496_v50 = vadd.f32 %v1887_v48, %v1495_v49  ;;  %v2024_v51 = vpop.f32.mrb[29].mxu1 }
 0xdf6   : > { %v1498_v52 = vpop.f32.mrb[30].mxu1 }
 0xdf7   : > { %v1501_v53 = vmax.f32 %v1496_v50, 0.0  ;;  %v2025_v54 = vpop.f32.mrb[31].mxu1 }
 0xdf9   : > { %v1502_v55 = vpack.c.bf16 %v1501_v53, %v1501_v53 }
 0xdfb   : > { %2035 = vmatmul.mubr.msk.bf16.vlgmr.msra.gmra.mrb[24].mxu0 %vm1542_vm4, %v1502_v55 }
 0xece   : > { %v1580_v57 = vpop.f32.mrb[24].mxu0 }
 0xecf   : > { %v1581_v58 = vadd.f32 %v1891_v56, %v1580_v57  ;;  %v2036_v59 = vpop.f32.mrb[25].mxu0 }
 0xed0   : > { %v1583_v60 = vpop.f32.mrb[26].mxu0 }
 0xed1   : > { %v2037_v61 = vpop.f32.mrb[27].mxu0  ;;  %v1586_v62 = vadd.f32 %v1581_v58, %v1433_v44 }
 0xed3   : > { %v1589_v0 = vsel %vm703_vm1, %v1586_v62, 0.0 }
 0xed4   : > { %1590 = vadd.xlane.f32.xlu1 %v1589_v0 }
 0xf61   : > { %v1591_v24 = vpop.xlane.xlu1 %1590 }
 0xf62   : > { %v1592_v63 = vmul.f32 0.03125, %v1591_v24 }
 0xf64   : > { %v1593_v1 = vsub.f32 %v1586_v62, %v1592_v63 }
 0xf66   : > { %v1594_v2 = vmul.f32 %v1593_v1, %v1593_v1 }
 0xf68   : > { %v1595_v11 = vsel %vm703_vm1, %v1594_v2, 0.0 }
 0xf69   : > { %1596 = vadd.xlane.f32.xlu1 %v1595_v11 }
 0xff6   : > { %v1597_v4 = vpop.xlane.xlu1 %1596 }
 0xff7   : > { %v1598_v5 = vmul.f32 0.03125, %v1597_v4 }
 0xff9   : > { %v1599_v6 = vadd.f32 1e-06, %v1598_v5 }
 0xffb   : > { %2251 = vrsqrt.f32 %v1599_v6 }
0x1005   : > { %v2252_v7 = vpop.eup %2251 }
0x1006   : > { %v1601_v9 = vmul.f32 %v2252_v7, %v1593_v1 }
0x1008   : > { %v1608_v12 = vmul.f32 %v1897_v8, %v1601_v9 }
0x100a   : > { %v1615_v14 = vadd.f32 %v1898_v10, %v1608_v12 }
0x100c   : > { %1616 = vst.msk [vmem:[%s674_s0] sm:$0xff] %vm703_vm1, %v1615_v14 }
0x100d   : > { %2662 = shalt.err (!%p2659_p2)
}
0x100e   : > { %s2663_s3 = scalar_lea.hbm %s3434_s6, 128  ;;  %s2667_s0 = scalar_lea.hbm %s3557_s14, 256 }
0x100f   : > { %p2664_p4 = scmp.ne.s32.totalorder %s3434_s6, %s2663_s3  ;;  %p2668_p7 = scmp.lt.u32.totalorder %s3434_s6, %s3557_s14 }
0x1010   : > { %p2669_p0 = scmp.lt.u32.totalorder %s2667_s0, %s2663_s3  ;;  %p2671_p11 = scmp.lt.u32.totalorder %s2663_s3, %s3434_s6 }
0x1011   : > { %p2665_p10 = pnand %p2664_p4, %p3558_p8 }
0x1012   : > { %p2670_p6 = por %p2669_p0, %p2668_p7 }
0x1013   : > { %p2666_p5 = pneg %p2665_p10 }
0x1014   : > { %p2672_p9 = por %p2671_p11, %p2670_p6 }
0x1016   : > { %p2673_p12 = pnand %p2672_p9, %p2666_p5 }
0x1018   : > { %2676 = shalt.err (!%p2673_p12)
}
0x1019   : > { %2090 = dma.vmem_to_hbm [thread:$0]  (%p3558_p8), %s3436_s20, 128, %s3434_s6, %s1618_s21  }
0x101a PF: > { %s3559_s29 = sld [smem:[#allocation36_spill]]  ;;  %p3560_p13 = scmp.ne.s32.totalorder %s3533_s27, 0 }
0x101b   : > { %p3561_p1 = scmp.ge.s32.totalorder %s2747_s16, 2 }
0x101d   : > { %p2137_p3 = pnand %p3561_p1, %p3560_p13 }
0x1020   : > { %s1643_s4 = sand.u32 1, %s3559_s29  }
0x1021   : > { %s1644_s1 = scalar_lea.sflag [#allocation4], %s1643_s4 }
0x1022   : > { %2730 = dma.done.wait (!%p2137_p3), %s1644_s1, 128  }
0x1023   : > { %2732 = vsyncadd (!%p2137_p3), %s1644_s1, 4294967168  ;;  %p36_p2 = scmp.ge.s32.totalorder %s3152_s23, 4   ;;  %s3562_s29 = smov %s2739_s30 }
0x1024   : > { %s3563_s30 = smov %s2743_s15  ;;  %s3564_s15 = smov %s3163_s2 }
0x1025   : > { %s3565_s16 = smov %s3152_s23  ;;  %38 = sbr.rel (!%p36_p2) target bundleno = 22 (0x16), region = 185 }
0x102c   :  { %1649 = vsyncpa [#allocation3], 1 }
0x102d   :  { %1651 = vsyncpa [#allocation3 + $0x1], 1 }
0x102e   :  { %1652 = vsyncpa [#allocation6], 1 }
0x102f   :  { %1654 = vsyncpa [#allocation6 + $0x1], 1 }
0x1030   :  { %1655 = vsyncpa [#allocation9], 1 }
0x1031   :  { %1656 = vsyncpa [#allocation12], 1 }
0x1032   :  { %1657 = vsyncpa [#allocation15], 1 }
0x1033   :  { %1658 = vsyncpa [#allocation18], 1 }
0x1034   :  { %1659 = vsyncpa [#allocation21], 1 }
0x1035   :  { %1660 = vsyncpa [#allocation24], 1 }
0x1036   :  { %1661 = vsyncpa [#allocation4], 1 }
0x1037   :  { %1663 = vsyncpa [#allocation4 + $0x1], 1 }

</bundles_post_ra>
